<compile_context>
chip_gen: v5e
topology: v5e:2x2
jax: 0.10.0
libtpu: 0.0.40
codegen_flags: <defaults>
</compile_context>

<pallas_src>
import jax
import jax.numpy as jnp
from jax import lax
from jax.experimental import pallas as pl
from jax.experimental.pallas import tpu as pltpu
from functools import reduce
from operator import mul


def _round_up(x, m):
    return ((x + m - 1) // m) * m


def _mlp_kernel(x_ref, w1_ref, b1_ref, w2_ref, b2_ref, w3r_ref, b3_ref, o_ref):
    """Fused forward of myNeural for one batch tile.

    h1 = relu(x @ W1 + b1); h2 = relu(h1 @ W2 + b2); out_row = W3_row · h2^T + b3
    Matmul operands are bf16 (MXU native); accumulation / bias / ReLU in f32.
    The final layer contracts the (1, H) weight row against h2's H axis, giving a
    lane-dense (1, tb) result (tb is a multiple of 128 -> unmasked vst).
    """
    x = x_ref[...]                                                     # (tb, D) bf16
    h1 = jnp.dot(x, w1_ref[...], preferred_element_type=jnp.float32) + b1_ref[...]
    h1 = jnp.maximum(h1, 0.0)                                          # act_func_1 = ReLU
    h2 = jnp.dot(h1.astype(jnp.bfloat16), w2_ref[...],
                 preferred_element_type=jnp.float32) + b2_ref[...]
    h2 = jnp.maximum(h2, 0.0)                                          # act_func_2 = ReLU
    out = lax.dot_general(                                             # (1, tb) f32
        w3r_ref[...], h2.astype(jnp.bfloat16),
        dimension_numbers=(((1,), (1,)), ((), ())),
        preferred_element_type=jnp.float32)
    o_ref[...] = (out + b3_ref[0, 0]).astype(o_ref.dtype)


def prepare_params(params):
    """One-time parameter prep (hoisted out of the forward): cast weights to bf16
    (MXU native), keep biases f32, and lay the final layer out as a lane-dense
    (1, H) row.  Call once; reuse the result for every forward call."""
    return {
        "w1": params["w1"].astype(jnp.bfloat16),                       # (D, H)
        "b1": params["b1"].astype(jnp.float32).reshape(1, -1),         # (1, H)
        "w2": params["w2"].astype(jnp.bfloat16),                       # (H, H)
        "b2": params["b2"].astype(jnp.float32).reshape(1, -1),         # (1, H)
        "w3r": params["w3"].astype(jnp.bfloat16).reshape(1, -1),       # (1, H) == W3^T
        "b3": params["b3"].astype(jnp.float32).reshape(1, 1),          # (1, 1) scalar
    }


def my_neural_forward(x, prep, *, tb=None):
    """JAX/Pallas equivalent of myNeural.forward.

    x    : (B, *input_shape) float32/bf16
    prep : output of prepare_params
    returns (B,) float32  (torch.squeeze of the (B, 1) linear output)
    """
    B = x.shape[0]
    D = reduce(mul, x.shape[1:])
    H = prep["w1"].shape[1]
    assert prep["w1"].shape[0] == D

    x_flat = x.reshape(B, D).astype(jnp.bfloat16)      # nn.Flatten + bf16 for MXU

    # Batch tile selection: one big tile for small B; otherwise 256-1024-row
    # tiles with an (at least) even count so v7x's two TensorCores both get work.
    # tb is always a multiple of 128 so the (1, tb) output store is lane-dense.
    Bp128 = _round_up(B, 128)
    if tb is None:
        if Bp128 <= 512:
            tb = Bp128                                  # single tile, grid=(1,)
        else:
            tb = min(1024, max(256, _round_up(pl.cdiv(Bp128, 2), 128)))
    tb = _round_up(tb, 128)
    Bp = _round_up(B, tb)
    nb = Bp // tb

    # Only the batch axis is padded; D (=400) stays unpadded -- the full-array
    # last dim is exempt from the 128-lane block rule and Mosaic pads K in vregs.
    x_p = jnp.pad(x_flat, ((0, Bp - B), (0, 0))) if Bp != B else x_flat

    flops = 2 * Bp * (D * H + H * H + H)
    bytes_accessed = (x_p.size * 2 + prep["w1"].size * 2 + prep["w2"].size * 2
                      + prep["w3r"].size * 2 + prep["b1"].size * 4
                      + prep["b2"].size * 4 + prep["b3"].size * 4 + Bp * 4)

    out = pl.pallas_call(
        _mlp_kernel,
        out_shape=jax.ShapeDtypeStruct((1, Bp), jnp.float32),
        grid=(nb,),
        in_specs=[
            pl.BlockSpec((tb, D), lambda b: (b, 0)),    # activations: tiled over batch
            pl.BlockSpec((D, H), lambda b: (0, 0)),     # weights/biases: constant index
            pl.BlockSpec((1, H), lambda b: (0, 0)),     #   maps -> fetched once, stay
            pl.BlockSpec((H, H), lambda b: (0, 0)),     #   VMEM-resident across tiles
            pl.BlockSpec((1, H), lambda b: (0, 0)),
            pl.BlockSpec((1, H), lambda b: (0, 0)),
            pl.BlockSpec(memory_space=pltpu.MemorySpace.SMEM),   # scalar b3
        ],
        out_specs=pl.BlockSpec((1, tb), lambda b: (0, b)),       # lane-dense row
        compiler_params=pltpu.CompilerParams(
            # Batch tiles are independent -> shard across both TCs on v7x;
            # harmless on single-TC v5e/v6e.  At tb <= 1024 the resident VMEM
            # (double-buffered x tile + weights + f32 intermediates) is ~3 MiB,
            # far under every generation's default scoped limit, so no explicit
            # vmem_limit_bytes.  (Set it if tb is ever pushed beyond ~2048.)
            dimension_semantics=("parallel",),
        ),
        cost_estimate=pl.CostEstimate(
            flops=flops, transcendentals=0, bytes_accessed=bytes_accessed),
    )(x_p, prep["w1"], prep["b1"], prep["w2"], prep["b2"], prep["w3r"], prep["b3"])

    # torch.squeeze of the (B, 1) linear output -> (B,); padded rows discarded.
    return out[0, :B]


def init_params(key, input_shape=(20, 20), hidden_size=256):
    """Deterministic init mirroring nn.Linear defaults (uniform +-1/sqrt(fan_in)),
    stored in torch-like f32 shapes; prepare_params() does the one-time bf16 prep."""
    D = reduce(mul, input_shape)
    H = hidden_size
    ks = jax.random.split(key, 6)

    def lin(kw, kb, fan_in, fan_out):
        bound = 1.0 / (fan_in ** 0.5)
        w = jax.random.uniform(kw, (fan_in, fan_out), jnp.float32, -bound, bound)
        b = jax.random.uniform(kb, (1, fan_out), jnp.float32, -bound, bound)
        return w, b

    w1, b1 = lin(ks[0], ks[1], D, H)
    w2, b2 = lin(ks[2], ks[3], H, H)
    w3, b3 = lin(ks[4], ks[5], H, 1)
    return {"w1": w1, "b1": b1, "w2": w2, "b2": b2, "w3": w3, "b3": b3}


def _reference(x, prep):
    """Pure-JAX reference of the same math (bf16 operands, f32 accumulation)."""
    B = x.shape[0]
    xb = x.reshape(B, -1).astype(jnp.bfloat16)
    h1 = jnp.maximum(
        jnp.dot(xb, prep["w1"], preferred_element_type=jnp.float32) + prep["b1"], 0.0)
    h2 = jnp.maximum(
        jnp.dot(h1.astype(jnp.bfloat16), prep["w2"],
                preferred_element_type=jnp.float32) + prep["b2"], 0.0)
    out = jnp.dot(h2.astype(jnp.bfloat16), prep["w3r"].T,
                  preferred_element_type=jnp.float32)[:, 0] + prep["b3"][0, 0]
    return out


if __name__ == "__main__":
    key = jax.random.PRNGKey(0)
    k_x, k_x2, k_p = jax.random.split(key, 3)

    input_shape = (20, 20)   # myNeural default -> input_size = 400
    hidden_size = 256        # myNeural default

    params = init_params(k_p, input_shape, hidden_size)
    prep = prepare_params(params)     # one-time weight cast / layout prep

    # Small batch: single 128-row tile, grid=(1,).
    batch = 32
    x = jax.random.normal(k_x, (batch,) + input_shape, dtype=jnp.float32)
    out = jax.block_until_ready(my_neural_forward(x, prep))
    ref = _reference(x, prep)
    assert out.shape == (batch,)
    assert jnp.allclose(out, ref, atol=5e-3, rtol=5e-3)

    # Larger batch with an explicit smaller tile to exercise the multi-tile grid
    # path (nb = 3) and the lane-blocked (1, tb) output index map.
    batch2 = 384
    x2 = jax.random.normal(k_x2, (batch2,) + input_shape, dtype=jnp.float32)
    out2 = jax.block_until_ready(my_neural_forward(x2, prep, tb=128))
    ref2 = _reference(x2, prep)
    assert out2.shape == (batch2,)
    assert jnp.allclose(out2, ref2, atol=5e-3, rtol=5e-3)

    print("KERNEL_OK")
</pallas_src>

<mosaic_0001>
module attributes {stable_mosaic.version = 11 : i64} {
  func.func @_mlp_kernel(%arg0: i32, %arg1: memref<128x400xbf16, #tpu.memory_space<vmem>>, %arg2: memref<400x256xbf16, #tpu.memory_space<vmem>>, %arg3: memref<1x256xf32, #tpu.memory_space<vmem>>, %arg4: memref<256x256xbf16, #tpu.memory_space<vmem>>, %arg5: memref<1x256xf32, #tpu.memory_space<vmem>>, %arg6: memref<1x256xbf16, #tpu.memory_space<vmem>>, %arg7: memref<1x1xf32, #tpu.memory_space<smem>>, %arg8: memref<1x128xf32, #tpu.memory_space<vmem>>) attributes {dimension_semantics = [#tpu.dimension_semantics<parallel>], iteration_bounds = array<i64: 1>, scalar_prefetch = 0 : i64, scratch_operands = 0 : i64, tpu.core_type = #tpu.core_type<tc>, window_params = [{transform_indices = @transform_0, window_bounds = array<i64: 128, 400>}, {pipeline_mode = #tpu.pipeline_mode<synchronous>, transform_indices = @transform_1, window_bounds = array<i64: 400, 256>}, {pipeline_mode = #tpu.pipeline_mode<synchronous>, transform_indices = @transform_2, window_bounds = array<i64: 1, 256>}, {pipeline_mode = #tpu.pipeline_mode<synchronous>, transform_indices = @transform_3, window_bounds = array<i64: 256, 256>}, {pipeline_mode = #tpu.pipeline_mode<synchronous>, transform_indices = @transform_4, window_bounds = array<i64: 1, 256>}, {pipeline_mode = #tpu.pipeline_mode<synchronous>, transform_indices = @transform_5, window_bounds = array<i64: 1, 256>}, {transform_indices = @transform_6, window_bounds = array<i64: 1, 1>}, {transform_indices = @transform_7, window_bounds = array<i64: 1, 128>}]} {
    %c0 = arith.constant 0 : index
    %c0_0 = arith.constant 0 : index
    %0 = vector.load %arg1[%c0, %c0_0] : memref<128x400xbf16, #tpu.memory_space<vmem>>, vector<128x400xbf16>
    %c0_1 = arith.constant 0 : index
    %c0_2 = arith.constant 0 : index
    %1 = vector.load %arg2[%c0_1, %c0_2] : memref<400x256xbf16, #tpu.memory_space<vmem>>, vector<400x256xbf16>
    %cst = arith.constant dense<0.000000e+00> : vector<128x256xf32>
    %2 = tpu.matmul %0, %1, %cst {dimension_numbers = #tpu.dot_dimension_numbers<[1], [0], [0], [1], [0, 0, 1, 1], [], []>} : vector<128x400xbf16>, vector<400x256xbf16>, vector<128x256xf32> -> vector<128x256xf32>
    %c0_3 = arith.constant 0 : index
    %c0_4 = arith.constant 0 : index
    %3 = vector.load %arg3[%c0_3, %c0_4] : memref<1x256xf32, #tpu.memory_space<vmem>>, vector<1x256xf32>
    %4 = vector.broadcast %3 : vector<1x256xf32> to vector<128x256xf32>
    %5 = arith.addf %2, %4 : vector<128x256xf32>
    %cst_5 = arith.constant 0.000000e+00 : f32
    %6 = vector.broadcast %cst_5 : f32 to vector<128x256xf32>
    %7 = arith.maximumf %5, %6 : vector<128x256xf32>
    %8 = arith.truncf %7 : vector<128x256xf32> to vector<128x256xbf16>
    %c0_6 = arith.constant 0 : index
    %c0_7 = arith.constant 0 : index
    %9 = vector.load %arg4[%c0_6, %c0_7] : memref<256x256xbf16, #tpu.memory_space<vmem>>, vector<256x256xbf16>
    %cst_8 = arith.constant dense<0.000000e+00> : vector<128x256xf32>
    %10 = tpu.matmul %8, %9, %cst_8 {dimension_numbers = #tpu.dot_dimension_numbers<[1], [0], [0], [1], [0, 0, 1, 1], [], []>} : vector<128x256xbf16>, vector<256x256xbf16>, vector<128x256xf32> -> vector<128x256xf32>
    %c0_9 = arith.constant 0 : index
    %c0_10 = arith.constant 0 : index
    %11 = vector.load %arg5[%c0_9, %c0_10] : memref<1x256xf32, #tpu.memory_space<vmem>>, vector<1x256xf32>
    %12 = vector.broadcast %11 : vector<1x256xf32> to vector<128x256xf32>
    %13 = arith.addf %10, %12 : vector<128x256xf32>
    %cst_11 = arith.constant 0.000000e+00 : f32
    %14 = vector.broadcast %cst_11 : f32 to vector<128x256xf32>
    %15 = arith.maximumf %13, %14 : vector<128x256xf32>
    %c0_12 = arith.constant 0 : index
    %c0_13 = arith.constant 0 : index
    %16 = vector.load %arg6[%c0_12, %c0_13] : memref<1x256xbf16, #tpu.memory_space<vmem>>, vector<1x256xbf16>
    %17 = arith.truncf %15 : vector<128x256xf32> to vector<128x256xbf16>
    %cst_14 = arith.constant dense<0.000000e+00> : vector<1x128xf32>
    %18 = tpu.matmul %16, %17, %cst_14 {dimension_numbers = #tpu.dot_dimension_numbers<[1], [1], [0], [0], [0, 0, 1, 0], [], []>} : vector<1x256xbf16>, vector<128x256xbf16>, vector<1x128xf32> -> vector<1x128xf32>
    %c0_15 = arith.constant 0 : index
    %c0_16 = arith.constant 0 : index
    %19 = memref.load %arg7[%c0_15, %c0_16] : memref<1x1xf32, #tpu.memory_space<smem>>
    %20 = vector.broadcast %19 : f32 to vector<1x128xf32>
    %21 = arith.addf %18, %20 : vector<1x128xf32>
    %c0_17 = arith.constant 0 : index
    %c0_18 = arith.constant 0 : index
    %22 = vector.load %arg8[%c0_17, %c0_18] : memref<1x128xf32, #tpu.memory_space<vmem>>, vector<1x128xf32>
    tpu.vector_store %arg8[%c0_17, %c0_18], %21 {strides = array<i32>} : memref<1x128xf32, #tpu.memory_space<vmem>>, vector<1x128xf32>,
    return
  }
  func.func @transform_0(%arg0: i32) -> (i32, i32) {
    %c0_i32 = arith.constant 0 : i32
    %c0_i32_0 = arith.constant 0 : i32
    return %arg0, %c0_i32 : i32, i32
  }
  func.func @transform_1(%arg0: i32) -> (i32, i32) {
    %c0_i32 = arith.constant 0 : i32
    %c0_i32_0 = arith.constant 0 : i32
    %c0_i32_1 = arith.constant 0 : i32
    return %c0_i32, %c0_i32_0 : i32, i32
  }
  func.func @transform_2(%arg0: i32) -> (i32, i32) {
    %c0_i32 = arith.constant 0 : i32
    %c0_i32_0 = arith.constant 0 : i32
    %c0_i32_1 = arith.constant 0 : i32
    return %c0_i32, %c0_i32_0 : i32, i32
  }
  func.func @transform_3(%arg0: i32) -> (i32, i32) {
    %c0_i32 = arith.constant 0 : i32
    %c0_i32_0 = arith.constant 0 : i32
    %c0_i32_1 = arith.constant 0 : i32
    return %c0_i32, %c0_i32_0 : i32, i32
  }
  func.func @transform_4(%arg0: i32) -> (i32, i32) {
    %c0_i32 = arith.constant 0 : i32
    %c0_i32_0 = arith.constant 0 : i32
    %c0_i32_1 = arith.constant 0 : i32
    return %c0_i32, %c0_i32_0 : i32, i32
  }
  func.func @transform_5(%arg0: i32) -> (i32, i32) {
    %c0_i32 = arith.constant 0 : i32
    %c0_i32_0 = arith.constant 0 : i32
    %c0_i32_1 = arith.constant 0 : i32
    return %c0_i32, %c0_i32_0 : i32, i32
  }
  func.func @transform_6(%arg0: i32) -> (i32, i32) {
    %c0_i32 = arith.constant 0 : i32
    %c0_i32_0 = arith.constant 0 : i32
    %c0_i32_1 = arith.constant 0 : i32
    return %c0_i32, %c0_i32_0 : i32, i32
  }
  func.func @transform_7(%arg0: i32) -> (i32, i32) {
    %c0_i32 = arith.constant 0 : i32
    %c0_i32_0 = arith.constant 0 : i32
    return %c0_i32, %arg0 : i32, i32
  }
}

</mosaic_0001>

<bundles_post_ra>
// kernel: tpu_custom_call.1
= control target key start
LH: loop header
LB: loop body
LE: loop exit
PB: predicated region body
PF: predicated region fallthrough
CT: control target
= control target key end

     0   :  { %13 = vsyncpa [#allocation4], 0  ;;  %s3009_s0 = inlined_call_operand.vmem [shape: bf16[128,400], index: 0, kind: input, shape index: {}]   ;;  %s3010_s1 = inlined_call_operand.vmem [shape: bf16[400,256], index: 1, kind: input, shape index: {}]   ;;  %s3011_s2 = inlined_call_operand.vmem [shape: f32[1,256], index: 2, kind: input, shape index: {}]   ;;  %s3012_s3 = inlined_call_operand.hbm [shape: bf16[256,256], index: 3, kind: input, shape index: {}]   ;;  %s3013_s4 = inlined_call_operand.vmem [shape: f32[1,256], index: 4, kind: input, shape index: {}]   ;;  %s3014_s5 = inlined_call_operand.vmem [shape: bf16[1,256], index: 5, kind: input, shape index: {}]   ;;  %s3015_s6 = inlined_call_operand.<no memory space> [shape: f32[1,1], index: 6, kind: input, shape index: {}]   ;;  %s3016_s7 = inlined_call_operand.hbm [shape: f32[1,128], index: 7, kind: output, shape index: {}]  }
   0x1   :  { %14 = vsyncpa [#allocation5], 0  ;;  %s25_s26 = sshll.u32 %s3012_s3, 4  ;;  %s2137_s27 = smov [#allocation3]   ;;  %s26_s26 = int_to_ptr.hbm [resolvable:$true] %s25_s26 }
   0x2   :  { %s27_s28 = sshll.u32 %s2137_s27, 4  ;;  %s2138_s29 = smov 128   ;;  %s28_s28 = int_to_ptr.vmem [resolvable:$true] %s27_s28 }
   0x3   :  { %s2139_s30 = smov 8  }
   0x4   :  { %33 = dma.hbm_to_vmem [thread:$0]  %s26_s26, 4096, %s28_s28, [#allocation4], %s2138_s29, %s2138_s29, %s2139_s30  }
   0x5   :  { %2133 = dma.done.wait [#allocation4], 4096  }
   0x6   :  { %2134 = vsyncadd [#allocation4], 4294963200  ;;  %vm535_vm0 = vcmask 130048   ;;  %v1681_v0 = vld [vmem:[%s3010_s1 + $0x70] sm:$0xf]  ;;  %s2140_s26 = smov [#allocation6]  }
   0x7   :  { %v2014_v1 = vld [vmem:[%s3010_s1 + $0x74] sm:$0xf0]  ;;  %v1745_v2 = vld [vmem:[%s3010_s1 + $0xf0] sm:$0xf]  ;;  %v1817_v9 = vld [vmem:[%s3010_s1 + $0x180] sm:$0xf] }
   0x8   :  { %v1682_v3 = vor.u32 %v2014_v1, %v1681_v0  ;;  %v2030_v4 = vld [vmem:[%s3010_s1 + $0xf4] sm:$0xf0]  ;;  %v1809_v5 = vld [vmem:[%s3010_s1 + $0x170] sm:$0xf]  ;;  %v2048_v10 = vld [vmem:[%s3010_s1 + $0x184] sm:$0xf0] }
   0x9   :  { %v2046_v6 = vld [vmem:[%s3010_s1 + $0x174] sm:$0xf0]  ;;  %v1746_v7 = vor.u32 %v2030_v4, %v1745_v2  ;;  %v1968_v11 = vld [vmem:[%s3009_s0 + $0xc] sm:$0xf]  ;;  %v1818_v12 = vor.u32 %v2048_v10, %v1817_v9  ;;  %v1507_v13 = vld [vmem:[%s3009_s0 + $0x18] sm:$0xf0] }
   0xa   :  { %v1810_v8 = vor.u32 %v2046_v6, %v1809_v5  ;;  %560 = vmatpush.bf16.msra.mxu0 %v1682_v3  ;;  %v1673_v14 = vld [vmem:[%s3010_s1 + $0x60] sm:$0xf]  ;;  %v2012_v15 = vld [vmem:[%s3010_s1 + $0x64] sm:$0xf0]  ;;  %v2220_v16 = vor.u32 %v1968_v11, %v1507_v13  ;;  %v1665_v23 = vld [vmem:[%s3010_s1 + $0x50] sm:$0xf] }
   0xb   :  { %609 = vmatpush.bf16.msra.mxu1 %v1746_v7  ;;  %v1674_v17 = vor.u32 %v2012_v15, %v1673_v14  ;;  %v1737_v18 = vld [vmem:[%s3010_s1 + $0xe0] sm:$0xf]  ;;  %v2028_v19 = vld [vmem:[%s3010_s1 + $0xe4] sm:$0xf0]  ;;  %714 = vmatpush.bf16.msra.mxu3 %v1818_v12  ;;  %v2010_v24 = vld [vmem:[%s3010_s1 + $0x54] sm:$0xf0] }
   0xc   :  { %658 = vmatpush.bf16.msra.mxu2 %v1810_v8  ;;  %v1801_v20 = vld [vmem:[%s3010_s1 + $0x160] sm:$0xf]  ;;  %v1738_v21 = vor.u32 %v2028_v19, %v1737_v18  ;;  %v2044_v22 = vld [vmem:[%s3010_s1 + $0x164] sm:$0xf0]  ;;  %v1729_v26 = vld [vmem:[%s3010_s1 + $0xd0] sm:$0xf]  ;;  %v1666_v29 = vor.u32 %v2010_v24, %v1665_v23 }
   0xd   :  { %v1802_v25 = vor.u32 %v2044_v22, %v1801_v20  ;;  %v2026_v27 = vld [vmem:[%s3010_s1 + $0xd4] sm:$0xf0]  ;;  %v1793_v28 = vld [vmem:[%s3010_s1 + $0x150] sm:$0xf]  ;;  %v1657_v32 = vld [vmem:[%s3010_s1 + $0x40] sm:$0xf] }
   0xe   :  { %561 = vmatpush.bf16.msra.mxu0 %v1674_v17  ;;  %v2042_v30 = vld [vmem:[%s3010_s1 + $0x154] sm:$0xf0]  ;;  %1823 = vmatmul.msk.bf16.vlgmr.msra.gmra.mxu3 %vm535_vm0, %v2220_v16  ;;  %v1730_v31 = vor.u32 %v2026_v27, %v1729_v26  ;;  %v2008_v33 = vld [vmem:[%s3010_s1 + $0x44] sm:$0xf0]  ;;  %v1721_v35 = vld [vmem:[%s3010_s1 + $0xc0] sm:$0xf] }
   0xf   :  { %610 = vmatpush.bf16.msra.mxu1 %v1738_v21  ;;  %v1794_v34 = vor.u32 %v2042_v30, %v1793_v28  ;;  %v2024_v36 = vld [vmem:[%s3010_s1 + $0xc4] sm:$0xf0]  ;;  %v1785_v37 = vld [vmem:[%s3010_s1 + $0x140] sm:$0xf]  ;;  %v1658_v39 = vor.u32 %v2008_v33, %v1657_v32  ;;  %v1649_v41 = vld [vmem:[%s3010_s1 + $0x30] sm:$0xf] }
  0x10   :  { %659 = vmatpush.bf16.msra.mxu2 %v1802_v25  ;;  %v2040_v38 = vld [vmem:[%s3010_s1 + $0x144] sm:$0xf0]  ;;  %v1722_v40 = vor.u32 %v2024_v36, %v1721_v35  ;;  %v2006_v42 = vld [vmem:[%s3010_s1 + $0x34] sm:$0xf0]  ;;  %v1713_v44 = vld [vmem:[%s3010_s1 + $0xb0] sm:$0xf] }
  0x11   :  { %v1786_v43 = vor.u32 %v2040_v38, %v1785_v37  ;;  %v2022_v45 = vld [vmem:[%s3010_s1 + $0xb4] sm:$0xf0]  ;;  %v1777_v46 = vld [vmem:[%s3010_s1 + $0x130] sm:$0xf]  ;;  %v1650_v48 = vor.u32 %v2006_v42, %v1649_v41  ;;  %v1972_v50 = vld [vmem:[%s3009_s0 + $0x2c] sm:$0xf] }
  0x12   :  { %562 = vmatpush.bf16.msra.mxu0 %v1666_v29  ;;  %v2038_v47 = vld [vmem:[%s3010_s1 + $0x134] sm:$0xf0]  ;;  %v1714_v49 = vor.u32 %v2022_v45, %v1713_v44  ;;  %v1641_v51 = vld [vmem:[%s3010_s1 + $0x20] sm:$0xf]  ;;  %v2004_v52 = vld [vmem:[%s3010_s1 + $0x24] sm:$0xf0] }
  0x13   :  { %611 = vmatpush.bf16.msra.mxu1 %v1730_v31  ;;  %v1778_v53 = vor.u32 %v2038_v47, %v1777_v46  ;;  %v1523_v54 = vld [vmem:[%s3009_s0 + $0x38] sm:$0xf0]  ;;  %v1705_v55 = vld [vmem:[%s3010_s1 + $0xa0] sm:$0xf]  ;;  %v2020_v56 = vld [vmem:[%s3010_s1 + $0xa4] sm:$0xf0]  ;;  %v1642_v59 = vor.u32 %v2004_v52, %v1641_v51 }
  0x14   :  { %660 = vmatpush.bf16.msra.mxu2 %v1794_v34  ;;  %v1769_v57 = vld [vmem:[%s3010_s1 + $0x120] sm:$0xf]  ;;  %v2036_v58 = vld [vmem:[%s3010_s1 + $0x124] sm:$0xf0]  ;;  %v2314_v60 = vor.u32 %v1972_v50, %v1523_v54  ;;  %v1706_v61 = vor.u32 %v2020_v56, %v1705_v55  ;;  %v1633_v62 = vld [vmem:[%s3010_s1 + $0x10] sm:$0xf] }
  0x15   :  { %v2002_v63 = vld [vmem:[%s3010_s1 + $0x14] sm:$0xf0]  ;;  %v1770_v0 = vor.u32 %v2036_v58, %v1769_v57  ;;  %v1697_v1 = vld [vmem:[%s3010_s1 + $0x90] sm:$0xf]  ;;  %v1625_v7 = vld [vmem:[%s3010_s1] sm:$0xf] }
  0x16   :  { %563 = vmatpush.bf16.msra.mxu0 %v1658_v39  ;;  %v2018_v2 = vld [vmem:[%s3010_s1 + $0x94] sm:$0xf0]  ;;  %v1761_v3 = vld [vmem:[%s3010_s1 + $0x110] sm:$0xf]  ;;  %v1634_v5 = vor.u32 %v2002_v63, %v1633_v62  ;;  %v2000_v8 = vld [vmem:[%s3010_s1 + $0x4] sm:$0xf0] }
  0x17   :  { %612 = vmatpush.bf16.msra.mxu1 %v1722_v40  ;;  %v2034_v4 = vld [vmem:[%s3010_s1 + $0x114] sm:$0xf0]  ;;  %v1698_v6 = vor.u32 %v2018_v2, %v1697_v1  ;;  %v1689_v10 = vld [vmem:[%s3010_s1 + $0x80] sm:$0xf]  ;;  %v2016_v11 = vld [vmem:[%s3010_s1 + $0x84] sm:$0xf0]  ;;  %v1626_v14 = vor.u32 %v2000_v8, %v1625_v7 }
  0x18   :  { %661 = vmatpush.bf16.msra.mxu2 %v1786_v43  ;;  %v1762_v9 = vor.u32 %v2034_v4, %v1761_v3  ;;  %v1753_v12 = vld [vmem:[%s3010_s1 + $0x100] sm:$0xf]  ;;  %v2032_v13 = vld [vmem:[%s3010_s1 + $0x104] sm:$0xf0]  ;;  %v1969_v17 = vld [vmem:[%s3009_s0 + $0xc] sm:$0xf0]  ;;  %v1690_v18 = vor.u32 %v2016_v11, %v1689_v10 }
  0x19   :  { %v1497_v15 = vld [vmem:[%s3009_s0] sm:$0xf]  ;;  %v1967_v19 = vld [vmem:[%s3009_s0 + $0x4] sm:$0xf]  ;;  %v1499_v20 = vld [vmem:[%s3009_s0 + $0x10] sm:$0xf0]  ;;  %v1754_v21 = vor.u32 %v2032_v13, %v1753_v12 }
  0x1a   :  { %564 = vmatpush.bf16.msra.mxu0 %v1650_v48  ;;  %v1505_v22 = vld [vmem:[%s3009_s0 + $0x8] sm:$0xf]  ;;  %v1970_v23 = vld [vmem:[%s3009_s0 + $0x14] sm:$0xf0]  ;;  %v2372_v24 = vor.u32 %v1969_v17, %v1497_v15  ;;  %v2374_v25 = vor.u32 %v1967_v19, %v1499_v20  ;;  %v1976_v27 = vld [vmem:[%s3009_s0 + $0x4c] sm:$0xf] }
  0x1b   :  { %613 = vmatpush.bf16.msra.mxu1 %v1714_v49  ;;  %v2376_v26 = vor.u32 %v1970_v23, %v1505_v22  ;;  %v1539_v28 = vld [vmem:[%s3009_s0 + $0x58] sm:$0xf0]  ;;  %v1513_v30 = vld [vmem:[%s3009_s0 + $0x20] sm:$0xf]  ;;  %v1973_v31 = vld [vmem:[%s3009_s0 + $0x2c] sm:$0xf0] }
  0x1c   :  { %662 = vmatpush.bf16.msra.mxu2 %v1778_v53  ;;  %v2387_v29 = vor.u32 %v1976_v27, %v1539_v28  ;;  %v1971_v32 = vld [vmem:[%s3009_s0 + $0x24] sm:$0xf]  ;;  %v1515_v33 = vld [vmem:[%s3009_s0 + $0x30] sm:$0xf0]  ;;  %v1521_v34 = vld [vmem:[%s3009_s0 + $0x28] sm:$0xf]  ;;  %v2409_v36 = vor.u32 %v1973_v31, %v1513_v30 }
  0x1d   :  { %v1974_v35 = vld [vmem:[%s3009_s0 + $0x34] sm:$0xf0]  ;;  %v2411_v37 = vor.u32 %v1971_v32, %v1515_v33  ;;  %v1980_v39 = vld [vmem:[%s3009_s0 + $0x6c] sm:$0xf]  ;;  %v1555_v40 = vld [vmem:[%s3009_s0 + $0x78] sm:$0xf0] }
  0x1e   :  { %565 = vmatpush.bf16.msra.mxu0 %v1642_v59  ;;  %1824 = vmatmul.msk.bf16.gmra.mxu3 %vm535_vm0, %v2314_v60  ;;  %v2413_v38 = vor.u32 %v1974_v35, %v1521_v34  ;;  %v2424_v41 = vor.u32 %v1980_v39, %v1555_v40  ;;  %v2013_v42 = vld [vmem:[%s3010_s1 + $0x74] sm:$0xf]  ;;  %v1683_v43 = vld [vmem:[%s3010_s1 + $0x78] sm:$0xf0]  ;;  %v1529_v45 = vld [vmem:[%s3009_s0 + $0x40] sm:$0xf] }
  0x1f   :  { %614 = vmatpush.bf16.msra.mxu1 %v1706_v61  ;;  %v1686_v44 = vor.u32 %v2013_v42, %v1683_v43  ;;  %v1977_v46 = vld [vmem:[%s3009_s0 + $0x4c] sm:$0xf0]  ;;  %v1975_v47 = vld [vmem:[%s3009_s0 + $0x44] sm:$0xf]  ;;  %v1531_v48 = vld [vmem:[%s3009_s0 + $0x50] sm:$0xf0] }
  0x20   :  { %663 = vmatpush.bf16.msra.mxu2 %v1770_v0  ;;  %v1537_v49 = vld [vmem:[%s3009_s0 + $0x48] sm:$0xf]  ;;  %v1978_v50 = vld [vmem:[%s3009_s0 + $0x54] sm:$0xf0]  ;;  %v2452_v51 = vor.u32 %v1977_v46, %v1529_v45  ;;  %v2454_v52 = vor.u32 %v1975_v47, %v1531_v48  ;;  %v1984_v54 = vld [vmem:[%s3009_s0 + $0x8c] sm:$0xf] }
  0x21   :  { %756 = vmatpush.bf16.msrb.mxu3 %v1686_v44  ;;  %v2456_v53 = vor.u32 %v1978_v50, %v1537_v49  ;;  %v1571_v55 = vld [vmem:[%s3009_s0 + $0x98] sm:$0xf0]  ;;  %v2047_v57 = vld [vmem:[%s3010_s1 + $0x184] sm:$0xf]  ;;  %v1819_v58 = vld [vmem:[%s3010_s1 + $0x188] sm:$0xf0] }
  0x22   :  { %566 = vmatpush.bf16.msra.mxu0 %v1634_v5  ;;  %v2467_v56 = vor.u32 %v1984_v54, %v1571_v55  ;;  %v2029_v59 = vld [vmem:[%s3010_s1 + $0xf4] sm:$0xf]  ;;  %v1822_v61 = vor.u32 %v2047_v57, %v1819_v58  ;;  %v1747_v62 = vld [vmem:[%s3010_s1 + $0xf8] sm:$0xf0]  ;;  %v2011_v2 = vld [vmem:[%s3010_s1 + $0x64] sm:$0xf] }
  0x23   :  { %615 = vmatpush.bf16.msra.mxu1 %v1698_v6  ;;  %v1750_v63 = vor.u32 %v2029_v59, %v1747_v62  ;;  %v2045_v0 = vld [vmem:[%s3010_s1 + $0x174] sm:$0xf]  ;;  %v1811_v1 = vld [vmem:[%s3010_s1 + $0x178] sm:$0xf0]  ;;  %v1675_v4 = vld [vmem:[%s3010_s1 + $0x68] sm:$0xf0] }
  0x24   :  { %664 = vmatpush.bf16.msra.mxu2 %v1762_v9  ;;  %v1814_v3 = vor.u32 %v2045_v0, %v1811_v1  ;;  %v2009_v5 = vld [vmem:[%s3010_s1 + $0x54] sm:$0xf]  ;;  %v1667_v6 = vld [vmem:[%s3010_s1 + $0x58] sm:$0xf0]  ;;  %v1678_v7 = vor.u32 %v2011_v2, %v1675_v4  ;;  %v1545_v8 = vld [vmem:[%s3009_s0 + $0x60] sm:$0xf] }
  0x25   :  { %v1981_v9 = vld [vmem:[%s3009_s0 + $0x6c] sm:$0xf0]  ;;  %v1979_v10 = vld [vmem:[%s3009_s0 + $0x64] sm:$0xf]  ;;  %v1547_v11 = vld [vmem:[%s3009_s0 + $0x70] sm:$0xf0]  ;;  %v1670_v12 = vor.u32 %v2009_v5, %v1667_v6 }
  0x26   :  { %567 = vmatpush.bf16.msra.mxu0 %v1626_v14  ;;  %757 = vmatpush.bf16.msrb.mxu3 %v1678_v7  ;;  %v1553_v13 = vld [vmem:[%s3009_s0 + $0x68] sm:$0xf]  ;;  %v1982_v14 = vld [vmem:[%s3009_s0 + $0x74] sm:$0xf0]  ;;  %v2519_v15 = vor.u32 %v1981_v9, %v1545_v8  ;;  %v2521_v17 = vor.u32 %v1979_v10, %v1547_v11  ;;  %v1988_v19 = vld [vmem:[%s3009_s0 + $0xac] sm:$0xf] }
  0x27   :  { %616 = vmatpush.bf16.msra.mxu1 %v1690_v18  ;;  %v2523_v18 = vor.u32 %v1982_v14, %v1553_v13  ;;  %v1587_v20 = vld [vmem:[%s3009_s0 + $0xb8] sm:$0xf0]  ;;  %v1659_v22 = vld [vmem:[%s3010_s1 + $0x48] sm:$0xf0]  ;;  %v2027_v28 = vld [vmem:[%s3010_s1 + $0xe4] sm:$0xf] }
  0x28   :  { %665 = vmatpush.bf16.msra.mxu2 %v1754_v21  ;;  %v2007_v21 = vld [vmem:[%s3010_s1 + $0x44] sm:$0xf]  ;;  %v2540_v27 = vor.u32 %v1988_v19, %v1587_v20  ;;  %v1739_v30 = vld [vmem:[%s3010_s1 + $0xe8] sm:$0xf0]  ;;  %v2005_v32 = vld [vmem:[%s3010_s1 + $0x34] sm:$0xf] }
  0x29   :  { %568 = vmatmul.bf16.vlgmr.msra.gmra.mxu0 %v2372_v24  ;;  %v1662_v23 = vor.u32 %v2007_v21, %v1659_v22  ;;  %v1742_v31 = vor.u32 %v2027_v28, %v1739_v30  ;;  %v1651_v33 = vld [vmem:[%s3010_s1 + $0x38] sm:$0xf0]  ;;  %v2043_v35 = vld [vmem:[%s3010_s1 + $0x164] sm:$0xf]  ;;  %v1803_v39 = vld [vmem:[%s3010_s1 + $0x168] sm:$0xf0] }
  0x2a   :  { %617 = vmatmul.bf16.vlgmr.msra.gmra.mxu1 %v2374_v25  ;;  %805 = vmatpush.bf16.msrb.mxu0 %v1750_v63  ;;  %v1654_v34 = vor.u32 %v2005_v32, %v1651_v33  ;;  %v2003_v40 = vld [vmem:[%s3010_s1 + $0x24] sm:$0xf]  ;;  %v1806_v42 = vor.u32 %v2043_v35, %v1803_v39  ;;  %v1643_v43 = vld [vmem:[%s3010_s1 + $0x28] sm:$0xf0]  ;;  %v2001_v45 = vld [vmem:[%s3010_s1 + $0x14] sm:$0xf] }
  0x2b   :  { %666 = vmatmul.bf16.vlgmr.msra.gmra.mxu2 %v2376_v26  ;;  %854 = vmatpush.bf16.msrb.mxu1 %v1814_v3  ;;  %v1646_v44 = vor.u32 %v2003_v40, %v1643_v43  ;;  %v1635_v46 = vld [vmem:[%s3010_s1 + $0x18] sm:$0xf0]  ;;  %v1561_v47 = vld [vmem:[%s3009_s0 + $0x80] sm:$0xf]  ;;  %v1985_v48 = vld [vmem:[%s3009_s0 + $0x8c] sm:$0xf0] }
  0x2c   :  { %910 = vmatpush.bf16.msrb.mxu2 %v1822_v61  ;;  %758 = vmatpush.bf16.msrb.mxu3 %v1670_v12  ;;  %v1983_v49 = vld [vmem:[%s3009_s0 + $0x84] sm:$0xf]  ;;  %v1563_v50 = vld [vmem:[%s3009_s0 + $0x90] sm:$0xf0]  ;;  %v1569_v54 = vld [vmem:[%s3009_s0 + $0x88] sm:$0xf]  ;;  %v1638_v57 = vor.u32 %v2001_v45, %v1635_v46  ;;  %v2592_v58 = vor.u32 %v1985_v48, %v1561_v47 }
  0x2d   :  { %v1986_v55 = vld [vmem:[%s3009_s0 + $0x94] sm:$0xf0]  ;;  %v2594_v59 = vor.u32 %v1983_v49, %v1563_v50  ;;  %v1992_v62 = vld [vmem:[%s3009_s0 + $0xcc] sm:$0xf]  ;;  %v1603_v63 = vld [vmem:[%s3009_s0 + $0xd8] sm:$0xf0] }
  0x2e   :  { %1825 = vmatmul.msk.bf16.gmra.mxu3 %vm535_vm0, %v2387_v29  ;;  %806 = vmatpush.bf16.msrb.mxu0 %v1742_v31  ;;  %v2596_v61 = vor.u32 %v1986_v55, %v1569_v54  ;;  %v1999_v0 = vld [vmem:[%s3010_s1 + $0x4] sm:$0xf]  ;;  %v1627_v1 = vld [vmem:[%s3010_s1 + $0x8] sm:$0xf0]  ;;  %v2613_v3 = vor.u32 %v1992_v62, %v1603_v63  ;;  %v2025_v4 = vld [vmem:[%s3010_s1 + $0xd4] sm:$0xf] }
  0x2f   :  { %855 = vmatpush.bf16.msrb.mxu1 %v1806_v42  ;;  %v1630_v2 = vor.u32 %v1999_v0, %v1627_v1  ;;  %v1731_v5 = vld [vmem:[%s3010_s1 + $0xd8] sm:$0xf0]  ;;  %v2041_v7 = vld [vmem:[%s3010_s1 + $0x154] sm:$0xf]  ;;  %v1577_v10 = vld [vmem:[%s3009_s0 + $0xa0] sm:$0xf] }
  0x30   :  { %759 = vmatpush.bf16.msrb.mxu3 %v1662_v23  ;;  %v1734_v6 = vor.u32 %v2025_v4, %v1731_v5  ;;  %v1795_v8 = vld [vmem:[%s3010_s1 + $0x158] sm:$0xf0]  ;;  %v1989_v11 = vld [vmem:[%s3009_s0 + $0xac] sm:$0xf0]  ;;  %v2023_v12 = vld [vmem:[%s3010_s1 + $0xc4] sm:$0xf] }
  0x31   :  { %v1798_v9 = vor.u32 %v2041_v7, %v1795_v8  ;;  %v1723_v13 = vld [vmem:[%s3010_s1 + $0xc8] sm:$0xf0]  ;;  %v2039_v14 = vld [vmem:[%s3010_s1 + $0x144] sm:$0xf]  ;;  %v1579_v20 = vld [vmem:[%s3009_s0 + $0xb0] sm:$0xf0]  ;;  %v2659_v31 = vor.u32 %v1989_v11, %v1577_v10 }
  0x32   :  { %807 = vmatpush.bf16.msrb.mxu0 %v1734_v6  ;;  %v1987_v19 = vld [vmem:[%s3009_s0 + $0xa4] sm:$0xf]  ;;  %v1726_v21 = vor.u32 %v2023_v12, %v1723_v13  ;;  %v1787_v22 = vld [vmem:[%s3010_s1 + $0x148] sm:$0xf0]  ;;  %v1585_v23 = vld [vmem:[%s3009_s0 + $0xa8] sm:$0xf] }
  0x33   :  { %856 = vmatpush.bf16.msrb.mxu1 %v1798_v9  ;;  %v1990_v28 = vld [vmem:[%s3009_s0 + $0xb4] sm:$0xf0]  ;;  %v1790_v30 = vor.u32 %v2039_v14, %v1787_v22  ;;  %v2661_v32 = vor.u32 %v1987_v19, %v1579_v20  ;;  %v1619_v35 = vld [vmem:[%s3009_s0 + $0xf8] sm:$0xf0]  ;;  %v2021_v39 = vld [vmem:[%s3010_s1 + $0xb4] sm:$0xf] }
  0x34   :  { %760 = vmatpush.bf16.msrb.mxu3 %v1654_v34  ;;  %v2663_v33 = vor.u32 %v1990_v28, %v1585_v23  ;;  %v1996_v34 = vld [vmem:[%s3009_s0 + $0xec] sm:$0xf]  ;;  %v1715_v40 = vld [vmem:[%s3010_s1 + $0xb8] sm:$0xf0]  ;;  %v2037_v42 = vld [vmem:[%s3010_s1 + $0x134] sm:$0xf] }
  0x35   :  { %v2683_v43 = vor.u32 %v1996_v34, %v1619_v35  ;;  %v1779_v45 = vld [vmem:[%s3010_s1 + $0x138] sm:$0xf0]  ;;  %v2019_v47 = vld [vmem:[%s3010_s1 + $0xa4] sm:$0xf]  ;;  %v1707_v48 = vld [vmem:[%s3010_s1 + $0xa8] sm:$0xf0] }
  0x36   :  { %808 = vmatpush.bf16.msrb.mxu0 %v1726_v21  ;;  %v1782_v46 = vor.u32 %v2037_v42, %v1779_v45  ;;  %v2035_v49 = vld [vmem:[%s3010_s1 + $0x124] sm:$0xf]  ;;  %v1710_v50 = vor.u32 %v2019_v47, %v1707_v48  ;;  %v1771_v54 = vld [vmem:[%s3010_s1 + $0x128] sm:$0xf0]  ;;  %v1699_v62 = vld [vmem:[%s3010_s1 + $0x98] sm:$0xf0] }
  0x37   :  { %857 = vmatpush.bf16.msrb.mxu1 %v1790_v30  ;;  %v1774_v55 = vor.u32 %v2035_v49, %v1771_v54  ;;  %v2033_v63 = vld [vmem:[%s3010_s1 + $0x114] sm:$0xf]  ;;  %v1593_v0 = vld [vmem:[%s3009_s0 + $0xc0] sm:$0xf]  ;;  %v1993_v1 = vld [vmem:[%s3009_s0 + $0xcc] sm:$0xf0] }
  0x38   :  { %761 = vmatpush.bf16.msrb.mxu3 %v1646_v44  ;;  %v1718_v44 = vor.u32 %v2021_v39, %v1715_v40  ;;  %v1763_v4 = vld [vmem:[%s3010_s1 + $0x118] sm:$0xf0]  ;;  %v1991_v5 = vld [vmem:[%s3009_s0 + $0xc4] sm:$0xf]  ;;  %v1595_v6 = vld [vmem:[%s3009_s0 + $0xd0] sm:$0xf0]  ;;  %v2732_v10 = vor.u32 %v1993_v1, %v1593_v0 }
  0x39   :  { %573 = vmatmul.bf16.gmra.mxu0 %v2409_v36  ;;  %v1766_v7 = vor.u32 %v2033_v63, %v1763_v4  ;;  %v1601_v8 = vld [vmem:[%s3009_s0 + $0xc8] sm:$0xf]  ;;  %v1994_v9 = vld [vmem:[%s3009_s0 + $0xd4] sm:$0xf0]  ;;  %v2015_v11 = vld [vmem:[%s3010_s1 + $0x84] sm:$0xf]  ;;  %v2743_v14 = vor.u32 %v1991_v5, %v1595_v6 }
  0x3a   :  { %622 = vmatmul.bf16.gmra.mxu1 %v2411_v37  ;;  %809 = vmatpush.bf16.msrb.mxu0 %v1718_v44  ;;  %v1691_v12 = vld [vmem:[%s3010_s1 + $0x88] sm:$0xf0]  ;;  %v2031_v13 = vld [vmem:[%s3010_s1 + $0x104] sm:$0xf]  ;;  %v2748_v21 = vor.u32 %v1994_v9, %v1601_v8  ;;  %v1609_v28 = vld [vmem:[%s3009_s0 + $0xe0] sm:$0xf] }
  0x3b   :  { %671 = vmatmul.bf16.gmra.mxu2 %v2413_v38  ;;  %858 = vmatpush.bf16.msrb.mxu1 %v1782_v46  ;;  %v1694_v19 = vor.u32 %v2015_v11, %v1691_v12  ;;  %v1755_v20 = vld [vmem:[%s3010_s1 + $0x108] sm:$0xf0]  ;;  %v1997_v30 = vld [vmem:[%s3009_s0 + $0xec] sm:$0xf0]  ;;  %v1995_v34 = vld [vmem:[%s3009_s0 + $0xe4] sm:$0xf] }
  0x3c   :  { %762 = vmatpush.bf16.msrb.mxu3 %v1638_v57  ;;  %v2017_v57 = vld [vmem:[%s3010_s1 + $0x94] sm:$0xf]  ;;  %v1758_v22 = vor.u32 %v2031_v13, %v1755_v20  ;;  %v1998_v39 = vld [vmem:[%s3009_s0 + $0xf4] sm:$0xf0]  ;;  %v2772_v40 = vor.u32 %v1997_v30, %v1609_v28  ;;  %v2785_v46 = vld [vmem:[%s3011_s2] sm:$0x3] }
  0x3d   :  { %v1611_v35 = vld [vmem:[%s3009_s0 + $0xf0] sm:$0xf0]  ;;  %v2788_v48 = vperm.slane %v2785_v46, 0  ;;  %s1483_s27 = sshll.u32 %s2140_s26, 4  ;;  %s1485_s30 = sshll.u32 %s3016_s7, 4  ;;  %s1484_s27 = int_to_ptr.vmem [resolvable:$true] %s1483_s27  ;;  %s1486_s30 = int_to_ptr.hbm [resolvable:$true] %s1485_s30 }
  0x3e   :  { %1826 = vmatmul.msk.bf16.gmra.mxu3 %vm535_vm0, %v2424_v41  ;;  %810 = vmatpush.bf16.msrb.mxu0 %v1710_v50  ;;  %v2774_v42 = vor.u32 %v1995_v34, %v1611_v35 }
  0x3f   :  { %859 = vmatpush.bf16.msrb.mxu1 %v1774_v55 }
  0x40   :  { %763 = vmatpush.bf16.msrb.mxu3 %v1630_v2  ;;  %v1702_v2 = vor.u32 %v2017_v57, %v1699_v62 }
  0x42   :  { %811 = vmatpush.bf16.msrb.mxu0 %v1702_v2 }
  0x43   :  { %860 = vmatpush.bf16.msrb.mxu1 %v1766_v7 }
  0x46   :  { %812 = vmatpush.bf16.msrb.mxu0 %v1694_v19 }
  0x47   :  { %861 = vmatpush.bf16.msrb.mxu1 %v1758_v22 }
  0x49   :  { %578 = vmatmul.bf16.gmra.mxu0 %v2452_v51 }
  0x4a   :  { %627 = vmatmul.bf16.gmra.mxu1 %v2454_v52 }
  0x4b   :  { %676 = vmatmul.bf16.gmra.mxu2 %v2456_v53 }
  0x4e   :  { %1827 = vmatmul.msk.bf16.gmra.mxu3 %vm535_vm0, %v2467_v56 }
  0x59   :  { %583 = vmatmul.bf16.gmra.mxu0 %v2519_v15 }
  0x5a   :  { %632 = vmatmul.bf16.gmra.mxu1 %v2521_v17 }
  0x5b   :  { %681 = vmatmul.bf16.gmra.mxu2 %v2523_v18 }
  0x5e   :  { %1828 = vmatmul.msk.bf16.gmra.mxu3 %vm535_vm0, %v2540_v27 }
  0x69   :  { %588 = vmatmul.bf16.gmra.mxu0 %v2592_v58 }
  0x6a   :  { %637 = vmatmul.bf16.gmra.mxu1 %v2594_v59 }
  0x6b   :  { %686 = vmatmul.bf16.gmra.mxu2 %v2596_v61 }
  0x6e   :  { %1829 = vmatmul.msk.bf16.gmra.mxu3 %vm535_vm0, %v2613_v3 }
  0x79   :  { %593 = vmatmul.bf16.gmra.mxu0 %v2659_v31 }
  0x7a   :  { %642 = vmatmul.bf16.gmra.mxu1 %v2661_v32 }
  0x7b   :  { %691 = vmatmul.bf16.gmra.mxu2 %v2663_v33 }
  0x7e   :  { %1830 = vmatmul.msk.bf16.gmra.mxu3 %vm535_vm0, %v2683_v43 }
  0x89   :  { %598 = vmatmul.bf16.gmra.mxu0 %v2732_v10 }
  0x8a   :  { %647 = vmatmul.bf16.gmra.mxu1 %v2743_v14 }
  0x8b   :  { %696 = vmatmul.bf16.gmra.mxu2 %v2748_v21 }
  0x8e   :  { %764 = vmatmul.bf16.vlgmr.msrb.gmra.mxu3 %v2372_v24  ;;  %v1617_v24 = vld [vmem:[%s3009_s0 + $0xe8] sm:$0xf] }
  0x8f   :  { %v2776_v44 = vor.u32 %v1998_v39, %v1617_v24 }
  0x91   :  { %v716_v23 = vpop.f32.mrf.mxu3 }
  0x99   :  { %603 = vmatmul.bf16.gmra.mxu0 %v2772_v40  ;;  %v718_v45 = vpop.f32.mrf.mxu3 }
  0x9a   :  { %652 = vmatmul.bf16.gmra.mxu1 %v2774_v42 }
  0x9b   :  { %701 = vmatmul.bf16.gmra.mxu2 %v2776_v44 }
  0x9e   :  { %769 = vmatmul.bf16.gmra.mxu3 %v2409_v36 }
  0xa1   :  { %v721_v47 = vpop.f32.mrf.mxu3 }
  0xa6   :  { %v569_v49 = vpop.f32.mrf.mxu0 }
  0xa7   :  { %v570_v50 = vadd.f32 %v569_v49, %v2788_v48  ;;  %v618_v54 = vpop.f32.mrf.mxu1 }
  0xa9   :  { %v619_v55 = vadd.f32 %v618_v54, %v570_v50  ;;  %813 = vmatmul.bf16.vlgmr.msrb.gmra.mxu0 %v2374_v25  ;;  %v723_v57 = vpop.f32.mrf.mxu3 }
  0xaa   :  { %862 = vmatmul.bf16.vlgmr.msrb.gmra.mxu1 %v2376_v26 }
  0xab   :  { %1831 = vmatmul.msk.bf16.vlgmr.msrb.gmra.mxu2 %vm535_vm0, %v2220_v16 }
  0xae   :  { %v667_v36 = vpop.f32.mrf.mxu2  ;;  %v571_v62 = vpop.f32.mrf.mxu0  ;;  %774 = vmatmul.bf16.gmra.mxu3 %v2452_v51 }
  0xaf   :  { %v668_v63 = vadd.f32 %v667_v36, %v619_v55  ;;  %v572_v0 = vadd.f32 %v571_v62, %v2788_v48  ;;  %v620_v1 = vpop.f32.mrf.mxu1  ;;  %v2064_v55 = vld [vmem:[#allocation3 + $0x74] sm:$0xf0] }
  0xb1   :  { %v717_v2 = vadd.f32 %v716_v23, %v668_v63  ;;  %v621_v4 = vadd.f32 %v620_v1, %v572_v0  ;;  %v726_v5 = vpop.f32.mrf.mxu3 }
  0xb3   :  { %v952_v51 = vmax.f32 %v717_v2, 0.0 }
  0xb6   :  { %v669_v6 = vpop.f32.mrf.mxu2  ;;  %v574_v7 = vpop.f32.mrf.mxu0 }
  0xb7   :  { %v670_v25 = vadd.f32 %v669_v6, %v621_v4  ;;  %v575_v8 = vadd.f32 %v574_v7, %v2788_v48  ;;  %v623_v26 = vpop.f32.mrf.mxu1  ;;  %v1889_v4 = vld [vmem:[#allocation3 + $0x60] sm:$0xf]  ;;  %v2062_v6 = vld [vmem:[#allocation3 + $0x64] sm:$0xf0] }
  0xb9   :  { %v719_v9 = vadd.f32 %v718_v45, %v670_v25  ;;  %v624_v11 = vadd.f32 %v623_v26, %v575_v8  ;;  %818 = vmatmul.bf16.gmra.mxu0 %v2411_v37  ;;  %v728_v16 = vpop.f32.mrf.mxu3  ;;  %v1881_v25 = vld [vmem:[#allocation3 + $0x50] sm:$0xf]  ;;  %v2060_v8 = vld [vmem:[#allocation3 + $0x54] sm:$0xf0] }
  0xba   :  { %867 = vmatmul.bf16.gmra.mxu1 %v2413_v38 }
  0xbb   :  { %v954_v12 = vmax.f32 %v719_v9, 0.0  ;;  %1832 = vmatmul.msk.bf16.gmra.mxu2 %vm535_vm0, %v2314_v60 }
  0xbd   :  { %v2802_v13 = vpack.c.bf16 %v954_v12, %v952_v51 }
  0xbe   :  { %v672_v19 = vpop.f32.mrf.mxu2  ;;  %v576_v20 = vpop.f32.mrf.mxu0  ;;  %779 = vmatmul.bf16.gmra.mxu3 %v2519_v15 }
  0xbf   :  { %v673_v22 = vadd.f32 %v672_v19, %v624_v11  ;;  %v577_v23 = vadd.f32 %v576_v20, %v2788_v48  ;;  %v625_v28 = vpop.f32.mrf.mxu1  ;;  %v1882_v11 = vor.u32 %v2060_v8, %v1881_v25 }
  0xc1   :  { %v722_v30 = vadd.f32 %v721_v47, %v673_v22  ;;  %v626_v37 = vadd.f32 %v625_v28, %v577_v23  ;;  %v2806_v34 = vpop.f32.mrf.mxu3  ;;  %v1897_v47 = vld [vmem:[#allocation3 + $0x70] sm:$0xf]  ;;  %v2058_v22 = vld [vmem:[#allocation3 + $0x44] sm:$0xf0] }
  0xc2   :  { %v1898_v0 = vor.u32 %v2064_v55, %v1897_v47 }
  0xc3   :  { %v956_v15 = vmax.f32 %v722_v30, 0.0 }
  0xc4   :  { %1198 = vmatpush.bf16.msra.mxu3 %v1898_v0 }
  0xc6   :  { %v674_v38 = vpop.f32.mrf.mxu2  ;;  %v579_v35 = vpop.f32.mrf.mxu0 }
  0xc7   :  { %v675_v24 = vadd.f32 %v674_v38, %v626_v37  ;;  %v580_v39 = vadd.f32 %v579_v35, %v2788_v48  ;;  %v628_v60 = vpop.f32.mrf.mxu1  ;;  %v1865_v38 = vld [vmem:[#allocation3 + $0x30] sm:$0xf]  ;;  %v2056_v35 = vld [vmem:[#allocation3 + $0x34] sm:$0xf0] }
  0xc9   :  { %v724_v45 = vadd.f32 %v723_v57, %v675_v24  ;;  %v629_v49 = vadd.f32 %v628_v60, %v580_v39  ;;  %823 = vmatmul.bf16.gmra.mxu0 %v2454_v52  ;;  %v2810_v50 = vpop.f32.mrf.mxu3 }
  0xca   :  { %872 = vmatmul.bf16.gmra.mxu1 %v2456_v53 }
  0xcb   :  { %v958_v54 = vmax.f32 %v724_v45, 0.0  ;;  %1833 = vmatmul.msk.bf16.gmra.mxu2 %vm535_vm0, %v2387_v29  ;;  %v1890_v29 = vor.u32 %v2062_v6, %v1889_v4  ;;  %v2052_v4 = vld [vmem:[#allocation3 + $0x14] sm:$0xf0] }
  0xcd   :  { %v2815_v36 = vpack.c.bf16 %v958_v54, %v956_v15  ;;  %1199 = vmatpush.bf16.msra.mxu3 %v1890_v29  ;;  %v1857_v54 = vld [vmem:[#allocation3 + $0x20] sm:$0xf] }
  0xce   :  { %v677_v62 = vpop.f32.mrf.mxu2  ;;  %v581_v63 = vpop.f32.mrf.mxu0  ;;  %784 = vmatmul.bf16.gmra.mxu3 %v2592_v58 }
  0xcf   :  { %v678_v57 = vadd.f32 %v677_v62, %v629_v49  ;;  %v582_v52 = vadd.f32 %v581_v63, %v2788_v48  ;;  %v630_v1 = vpop.f32.mrf.mxu1  ;;  %v1961_v62 = vld [vmem:[#allocation3 + $0xf0] sm:$0xf]  ;;  %v2080_v63 = vld [vmem:[#allocation3 + $0xf4] sm:$0xf0] }
  0xd0   :  { %v1962_v0 = vor.u32 %v2080_v63, %v1961_v62  ;;  %v1875_v63 = vld [vmem:[#allocation3 + $0x48] sm:$0xf0] }
  0xd1   :  { %v727_v53 = vadd.f32 %v726_v5, %v678_v57  ;;  %v631_v2 = vadd.f32 %v630_v1, %v582_v52  ;;  %v2819_v7 = vpop.f32.mrf.mxu3  ;;  %1200 = vmatpush.bf16.msra.mxu3 %v1882_v11  ;;  %v1873_v5 = vld [vmem:[#allocation3 + $0x40] sm:$0xf]  ;;  %v2079_v57 = vld [vmem:[#allocation3 + $0xf4] sm:$0xf]  ;;  %v1963_v52 = vld [vmem:[#allocation3 + $0xf8] sm:$0xf0] }
  0xd2   :  { %v1874_v28 = vor.u32 %v2058_v22, %v1873_v5  ;;  %v2063_v1 = vld [vmem:[#allocation3 + $0x74] sm:$0xf]  ;;  %1247 = vmatpush.bf16.msra.mxu0 %v1962_v0 }
  0xd3   :  { %v960_v30 = vmax.f32 %v727_v53, 0.0  ;;  %v1899_v53 = vld [vmem:[#allocation3 + $0x78] sm:$0xf0] }
  0xd5   :  { %1201 = vmatpush.bf16.msra.mxu3 %v1874_v28  ;;  %v2061_v28 = vld [vmem:[#allocation3 + $0x64] sm:$0xf] }
  0xd6   :  { %v679_v26 = vpop.f32.mrf.mxu2  ;;  %v584_v9 = vpop.f32.mrf.mxu0 }
  0xd7   :  { %v680_v51 = vadd.f32 %v679_v26, %v631_v2  ;;  %v585_v58 = vadd.f32 %v584_v9, %v2788_v48  ;;  %v633_v12 = vpop.f32.mrf.mxu1  ;;  %v1849_v2 = vld [vmem:[#allocation3 + $0x10] sm:$0xf] }
  0xd8   :  { %v1850_v25 = vor.u32 %v2052_v4, %v1849_v2  ;;  %v2055_v4 = vld [vmem:[#allocation3 + $0x34] sm:$0xf] }
  0xd9   :  { %v729_v19 = vadd.f32 %v728_v16, %v680_v51  ;;  %v634_v20 = vadd.f32 %v633_v12, %v585_v58  ;;  %828 = vmatmul.bf16.gmra.mxu0 %v2521_v17  ;;  %v2823_v23 = vpop.f32.mrf.mxu3  ;;  %v1866_v17 = vor.u32 %v2056_v35, %v1865_v38  ;;  %v1841_v58 = vld [vmem:[#allocation3] sm:$0xf]  ;;  %v2050_v12 = vld [vmem:[#allocation3 + $0x4] sm:$0xf0] }
  0xda   :  { %877 = vmatmul.bf16.gmra.mxu1 %v2523_v18 }
  0xdb   :  { %v962_v37 = vmax.f32 %v729_v19, 0.0  ;;  %1834 = vmatmul.msk.bf16.gmra.mxu2 %vm535_vm0, %v2424_v41  ;;  %1202 = vmatpush.bf16.msra.mxu3 %v1866_v17  ;;  %v2054_v41 = vld [vmem:[#allocation3 + $0x24] sm:$0xf0]  ;;  %v2059_v17 = vld [vmem:[#allocation3 + $0x54] sm:$0xf] }
  0xdc   :  { %v1858_v55 = vor.u32 %v2054_v41, %v1857_v54  ;;  %v2077_v54 = vld [vmem:[#allocation3 + $0xe4] sm:$0xf]  ;;  %v1955_v41 = vld [vmem:[#allocation3 + $0xe8] sm:$0xf0] }
  0xdd   :  { %v2828_v24 = vpack.c.bf16 %v962_v37, %v960_v30  ;;  %v1891_v30 = vld [vmem:[#allocation3 + $0x68] sm:$0xf0]  ;;  %v1958_v62 = vor.u32 %v2077_v54, %v1955_v41  ;;  %v2074_v54 = vld [vmem:[#allocation3 + $0xc4] sm:$0xf0]  ;;  %v2073_v41 = vld [vmem:[#allocation3 + $0xc4] sm:$0xf] }
  0xde   :  { %v682_v16 = vpop.f32.mrf.mxu2  ;;  %v586_v39 = vpop.f32.mrf.mxu0  ;;  %789 = vmatmul.bf16.gmra.mxu3 %v2659_v31  ;;  %v1966_v31 = vor.u32 %v2079_v57, %v1963_v52 }
  0xdf   :  { %v683_v60 = vadd.f32 %v682_v16, %v634_v20  ;;  %v587_v45 = vadd.f32 %v586_v39, %v2788_v48  ;;  %v635_v18 = vpop.f32.mrf.mxu1  ;;  %1203 = vmatpush.bf16.msra.mxu3 %v1858_v55  ;;  %v1842_v20 = vor.u32 %v2050_v12, %v1841_v58 }
  0xe0   :  { %1345 = vmatpush.bf16.msra.mxu2 %v1966_v31 }
  0xe1   :  { %v732_v49 = vadd.f32 %v2806_v34, %v683_v60  ;;  %v636_v15 = vadd.f32 %v635_v18, %v587_v45  ;;  %v2833_v47 = vpop.f32.mrf.mxu3  ;;  %v1902_v34 = vor.u32 %v2063_v1, %v1899_v53  ;;  %v1883_v60 = vld [vmem:[#allocation3 + $0x58] sm:$0xf0]  ;;  %v1953_v18 = vld [vmem:[#allocation3 + $0xe0] sm:$0xf] }
  0xe2   :  { %v1886_v45 = vor.u32 %v2059_v17, %v1883_v60 }
  0xe3   :  { %1296 = vmatpush.bf16.msra.mxu1 %v1902_v34  ;;  %1204 = vmatpush.bf16.msra.mxu3 %v1850_v25  ;;  %v964_v5 = vmax.f32 %v732_v49, 0.0  ;;  %v2078_v49 = vld [vmem:[#allocation3 + $0xe4] sm:$0xf0] }
  0xe4   :  { %1346 = vmatpush.bf16.msra.mxu2 %v1958_v62  ;;  %v1939_v62 = vld [vmem:[#allocation3 + $0xc8] sm:$0xf0] }
  0xe6   :  { %v684_v6 = vpop.f32.mrf.mxu2  ;;  %v589_v29 = vpop.f32.mrf.mxu0 }
  0xe7   :  { %v685_v8 = vadd.f32 %v684_v6, %v636_v15  ;;  %v590_v26 = vadd.f32 %v589_v29, %v2788_v48  ;;  %v638_v9 = vpop.f32.mrf.mxu1  ;;  %1205 = vmatpush.bf16.msra.mxu3 %v1842_v20  ;;  %v1954_v15 = vor.u32 %v2078_v49, %v1953_v18  ;;  %v1867_v6 = vld [vmem:[#allocation3 + $0x38] sm:$0xf0] }
  0xe8   :  { %v1870_v34 = vor.u32 %v2055_v4, %v1867_v6 }
  0xe9   :  { %v734_v11 = vadd.f32 %v2810_v50, %v685_v8  ;;  %v639_v51 = vadd.f32 %v638_v9, %v590_v26  ;;  %833 = vmatmul.bf16.gmra.mxu0 %v2594_v59  ;;  %v2838_v19 = vpop.f32.mrf.mxu3  ;;  %v1894_v59 = vor.u32 %v2061_v28, %v1891_v30  ;;  %v2053_v26 = vld [vmem:[#allocation3 + $0x24] sm:$0xf]  ;;  %v1859_v9 = vld [vmem:[#allocation3 + $0x28] sm:$0xf0]  ;;  %v1945_v30 = vld [vmem:[#allocation3 + $0xd0] sm:$0xf] }
  0xea   :  { %882 = vmatmul.bf16.gmra.mxu1 %v2596_v61  ;;  %1248 = vmatpush.bf16.msra.mxu0 %v1954_v15  ;;  %v1937_v15 = vld [vmem:[#allocation3 + $0xc0] sm:$0xf] }
  0xeb   :  { %v966_v22 = vmax.f32 %v734_v11, 0.0  ;;  %1835 = vmatmul.msk.bf16.gmra.mxu2 %vm535_vm0, %v2467_v56  ;;  %1297 = vmatpush.bf16.msra.mxu1 %v1894_v59  ;;  %v2075_v59 = vld [vmem:[#allocation3 + $0xd4] sm:$0xf] }
  0xed   :  { %v2843_v37 = vpack.c.bf16 %v966_v22, %v964_v5  ;;  %v2051_v5 = vld [vmem:[#allocation3 + $0x14] sm:$0xf]  ;;  %v1851_v22 = vld [vmem:[#allocation3 + $0x18] sm:$0xf0] }
  0xee   :  { %v687_v50 = vpop.f32.mrf.mxu2  ;;  %v591_v38 = vpop.f32.mrf.mxu0  ;;  %794 = vmatmul.bf16.gmra.mxu3 %v2732_v10  ;;  %v2057_v10 = vld [vmem:[#allocation3 + $0x44] sm:$0xf]  ;;  %v1854_v28 = vor.u32 %v2051_v5, %v1851_v22  ;;  %v2067_v22 = vld [vmem:[#allocation3 + $0x94] sm:$0xf] }
  0xef   :  { %v688_v35 = vadd.f32 %v687_v50, %v639_v51  ;;  %v640_v16 = vpop.f32.mrf.mxu1  ;;  %v592_v39 = vadd.f32 %v591_v38, %v2788_v48  ;;  %1298 = vmatpush.bf16.msra.mxu1 %v1886_v45  ;;  %v2076_v50 = vld [vmem:[#allocation3 + $0xd4] sm:$0xf0] }
  0xf0   :  { %v1946_v38 = vor.u32 %v2076_v50, %v1945_v30 }
  0xf1   :  { %v737_v61 = vadd.f32 %v2819_v7, %v688_v35  ;;  %v2848_v56 = vpop.f32.mrf.mxu3  ;;  %v641_v55 = vadd.f32 %v640_v16, %v592_v39  ;;  %v1878_v7 = vor.u32 %v2057_v10, %v1875_v63  ;;  %v1947_v35 = vld [vmem:[#allocation3 + $0xd8] sm:$0xf0]  ;;  %v1843_v39 = vld [vmem:[#allocation3 + $0x8] sm:$0xf0] }
  0xf2   :  { %1249 = vmatpush.bf16.msra.mxu0 %v1946_v38 }
  0xf3   :  { %1299 = vmatpush.bf16.msra.mxu1 %v1878_v7  ;;  %v968_v25 = vmax.f32 %v737_v61, 0.0  ;;  %v1950_v61 = vor.u32 %v2075_v59, %v1947_v35 }
  0xf5   :  { %1347 = vmatpush.bf16.msra.mxu2 %v1950_v61  ;;  %v1905_v61 = vld [vmem:[#allocation3 + $0x80] sm:$0xf] }
  0xf6   :  { %v689_v0 = vpop.f32.mrf.mxu2  ;;  %v594_v57 = vpop.f32.mrf.mxu0 }
  0xf7   :  { %v690_v52 = vadd.f32 %v689_v0, %v641_v55  ;;  %v595_v1 = vadd.f32 %v594_v57, %v2788_v48  ;;  %v643_v31 = vpop.f32.mrf.mxu1  ;;  %1300 = vmatpush.bf16.msra.mxu1 %v1870_v34  ;;  %v1938_v55 = vor.u32 %v2074_v54, %v1937_v15  ;;  %v1942_v0 = vor.u32 %v2073_v41, %v1939_v62 }
  0xf9   :  { %v739_v53 = vadd.f32 %v2823_v23, %v690_v52  ;;  %v644_v2 = vadd.f32 %v643_v31, %v595_v1  ;;  %838 = vmatmul.bf16.gmra.mxu0 %v2661_v32  ;;  %v2853_v29 = vpop.f32.mrf.mxu3  ;;  %v1862_v32 = vor.u32 %v2053_v26, %v1859_v9  ;;  %v1929_v1 = vld [vmem:[#allocation3 + $0xb0] sm:$0xf]  ;;  %v2072_v31 = vld [vmem:[#allocation3 + $0xb4] sm:$0xf0]  ;;  %1348 = vmatpush.bf16.msra.mxu2 %v1942_v0  ;;  %v2070_v26 = vld [vmem:[#allocation3 + $0xa4] sm:$0xf0] }
  0xfa   :  { %887 = vmatmul.bf16.gmra.mxu1 %v2663_v33  ;;  %1250 = vmatpush.bf16.msra.mxu0 %v1938_v55  ;;  %v2069_v9 = vld [vmem:[#allocation3 + $0xa4] sm:$0xf]  ;;  %v2890_v0 = vperm.slane %v2785_v46, 1 }
  0xfb   :  { %v970_v8 = vmax.f32 %v739_v53, 0.0  ;;  %1836 = vmatmul.msk.bf16.gmra.mxu2 %vm535_vm0, %v2540_v27  ;;  %1301 = vmatpush.bf16.msra.mxu1 %v1862_v32  ;;  %v1930_v53 = vor.u32 %v2072_v31, %v1929_v1 }
  0xfd   :  { %v2858_v11 = vpack.c.bf16 %v970_v8, %v968_v25  ;;  %v1921_v8 = vld [vmem:[#allocation3 + $0xa0] sm:$0xf] }
  0xfe   :  { %v692_v23 = vpop.f32.mrf.mxu2  ;;  %v596_v51 = vpop.f32.mrf.mxu0  ;;  %799 = vmatmul.bf16.gmra.mxu3 %v2772_v40  ;;  %v2049_v40 = vld [vmem:[#allocation3 + $0x4] sm:$0xf]  ;;  %1251 = vmatpush.bf16.msra.mxu0 %v1930_v53 }
  0xff   :  { %v693_v58 = vadd.f32 %v692_v23, %v644_v2  ;;  %v645_v12 = vpop.f32.mrf.mxu1  ;;  %v597_v20 = vadd.f32 %v596_v51, %v2788_v48  ;;  %1302 = vmatpush.bf16.msra.mxu1 %v1854_v28  ;;  %v2071_v2 = vld [vmem:[#allocation3 + $0xb4] sm:$0xf]  ;;  %v1923_v23 = vld [vmem:[#allocation3 + $0xa8] sm:$0xf0]  ;;  %v1915_v28 = vld [vmem:[#allocation3 + $0x98] sm:$0xf0] }
 0x100   :  { %v1918_v50 = vor.u32 %v2067_v22, %v1915_v28 }
 0x101   :  { %v742_v33 = vadd.f32 %v2833_v47, %v693_v58  ;;  %v2863_v27 = vpop.f32.mrf.mxu3  ;;  %v646_v16 = vadd.f32 %v645_v12, %v597_v20  ;;  %v1846_v47 = vor.u32 %v2049_v40, %v1843_v39  ;;  %v1926_v58 = vor.u32 %v2069_v9, %v1923_v23  ;;  %v2068_v20 = vld [vmem:[#allocation3 + $0x94] sm:$0xf0]  ;;  %v2066_v40 = vld [vmem:[#allocation3 + $0x84] sm:$0xf0]  ;;  %v2065_v39 = vld [vmem:[#allocation3 + $0x84] sm:$0xf] }
 0x103   :  { %1303 = vmatpush.bf16.msra.mxu1 %v1846_v47  ;;  %v972_v7 = vmax.f32 %v742_v33, 0.0  ;;  %v1913_v33 = vld [vmem:[#allocation3 + $0x90] sm:$0xf] }
 0x104   :  { %v1914_v5 = vor.u32 %v2068_v20, %v1913_v33 }
 0x106   :  { %v694_v17 = vpop.f32.mrf.mxu2  ;;  %v599_v60 = vpop.f32.mrf.mxu0 }
 0x107   :  { %v695_v45 = vadd.f32 %v694_v17, %v646_v16  ;;  %v600_v18 = vadd.f32 %v599_v60, %v2788_v48  ;;  %v648_v49 = vpop.f32.mrf.mxu1  ;;  %v1906_v17 = vor.u32 %v2066_v40, %v1905_v61  ;;  %v1907_v60 = vld [vmem:[#allocation3 + $0x88] sm:$0xf0] }
 0x109   :  { %v744_v10 = vadd.f32 %v2838_v19, %v695_v45  ;;  %v649_v63 = vadd.f32 %v648_v49, %v600_v18  ;;  %843 = vmatmul.bf16.gmra.mxu0 %v2743_v14  ;;  %v2868_v57 = vpop.f32.mrf.mxu3  ;;  %v1931_v19 = vld [vmem:[#allocation3 + $0xb8] sm:$0xf0]  ;;  %v1910_v18 = vor.u32 %v2065_v39, %v1907_v60 }
 0x10a   :  { %892 = vmatmul.bf16.gmra.mxu1 %v2748_v21  ;;  %v1934_v4 = vor.u32 %v2071_v2, %v1931_v19 }
 0x10b   :  { %v974_v52 = vmax.f32 %v744_v10, 0.0  ;;  %1837 = vmatmul.msk.bf16.gmra.mxu2 %vm535_vm0, %v2613_v3  ;;  %v1922_v3 = vor.u32 %v2070_v26, %v1921_v8 }
 0x10c   :  { %1349 = vmatpush.bf16.msra.mxu2 %v1934_v4 }
 0x10d   :  { %v2873_v6 = vpack.c.bf16 %v974_v52, %v972_v7  ;;  %1252 = vmatpush.bf16.msra.mxu0 %v1922_v3 }
 0x10e   :  { %v697_v14 = vpop.f32.mrf.mxu2  ;;  %v601_v34 = vpop.f32.mrf.mxu0  ;;  %1206 = vmatmul.bf16.vlgmr.msra.gmra.mxu3 %v2802_v13 }
 0x10f   :  { %v698_v25 = vadd.f32 %v697_v14, %v649_v63  ;;  %v650_v21 = vpop.f32.mrf.mxu1  ;;  %v602_v32 = vadd.f32 %v601_v34, %v2788_v48 }
 0x110   :  { %1350 = vmatpush.bf16.msra.mxu2 %v1926_v58 }
 0x111   :  { %v747_v51 = vadd.f32 %v2848_v56, %v698_v25  ;;  %v765_v12 = vpop.f32.mrf.mxu3  ;;  %v651_v30 = vadd.f32 %v650_v21, %v602_v32  ;;  %1253 = vmatpush.bf16.msra.mxu0 %v1914_v5 }
 0x112   :  { %v766_v53 = vadd.f32 %v765_v12, %v2890_v0 }
 0x113   :  { %v976_v15 = vmax.f32 %v747_v51, 0.0 }
 0x114   :  { %1351 = vmatpush.bf16.msra.mxu2 %v1918_v50 }
 0x115   :  { %1254 = vmatpush.bf16.msra.mxu0 %v1906_v17 }
 0x116   :  { %v699_v38 = vpop.f32.mrf.mxu2  ;;  %v604_v59 = vpop.f32.mrf.mxu0 }
 0x117   :  { %v700_v35 = vadd.f32 %v699_v38, %v651_v30  ;;  %v605_v16 = vadd.f32 %v604_v59, %v2788_v48  ;;  %v653_v56 = vpop.f32.mrf.mxu1 }
 0x118   :  { %1352 = vmatpush.bf16.msra.mxu2 %v1910_v18 }
 0x119   :  { %v749_v47 = vadd.f32 %v2853_v29, %v700_v35  ;;  %v654_v45 = vadd.f32 %v653_v56, %v605_v16  ;;  %848 = vmatmul.bf16.gmra.mxu0 %v2774_v42  ;;  %v767_v49 = vpop.f32.mrf.mxu3 }
 0x11a   :  { %897 = vmatmul.bf16.gmra.mxu1 %v2776_v44  ;;  %v768_v25 = vadd.f32 %v767_v49, %v2890_v0 }
 0x11b   :  { %v978_v54 = vmax.f32 %v749_v47, 0.0  ;;  %1838 = vmatmul.msk.bf16.gmra.mxu2 %vm535_vm0, %v2683_v43 }
 0x11d   :  { %v2884_v41 = vpack.c.bf16 %v978_v54, %v976_v15 }
 0x11e   :  { %v702_v55 = vpop.f32.mrf.mxu2  ;;  %v606_v62 = vpop.f32.mrf.mxu0  ;;  %1211 = vmatmul.bf16.gmra.mxu3 %v2815_v36 }
 0x11f   :  { %v703_v10 = vadd.f32 %v702_v55, %v654_v45  ;;  %v655_v29 = vpop.f32.mrf.mxu1  ;;  %v607_v63 = vadd.f32 %v606_v62, %v2788_v48 }
 0x121   :  { %v752_v42 = vadd.f32 %v2863_v27, %v703_v10  ;;  %v770_v44 = vpop.f32.mrf.mxu3  ;;  %v656_v7 = vadd.f32 %v655_v29, %v607_v63 }
 0x122   :  { %v771_v58 = vadd.f32 %v770_v44, %v2890_v0 }
 0x123   :  { %v980_v4 = vmax.f32 %v752_v42, 0.0 }
 0x126   :  { %v704_v52 = vpop.f32.mrf.mxu2  ;;  %v814_v43 = vpop.f32.mrf.mxu0 }
 0x127   :  { %v705_v1 = vadd.f32 %v704_v52, %v656_v7  ;;  %v863_v31 = vpop.f32.mrf.mxu1  ;;  %v815_v14 = vadd.f32 %v814_v43, %v766_v53 }
 0x129   :  { %v754_v2 = vadd.f32 %v2868_v57, %v705_v1  ;;  %v772_v19 = vpop.f32.mrf.mxu3  ;;  %v864_v8 = vadd.f32 %v863_v31, %v815_v14 }
 0x12a   :  { %1304 = vmatmul.bf16.vlgmr.msra.gmra.mxu1 %v2802_v13  ;;  %v773_v50 = vadd.f32 %v772_v19, %v2890_v0 }
 0x12b   :  { %v982_v27 = vmax.f32 %v754_v2, 0.0 }
 0x12d   :  { %v2895_v48 = vpack.c.bf16 %v982_v27, %v980_v4 }
 0x12e   :  { %v912_v34 = vpop.f32.mrf.mxu2  ;;  %v816_v46 = vpop.f32.mrf.mxu0  ;;  %1216 = vmatmul.bf16.gmra.mxu3 %v2828_v24 }
 0x12f   :  { %v865_v21 = vpop.f32.mrf.mxu1  ;;  %v817_v26 = vadd.f32 %v816_v46, %v768_v25  ;;  %v913_v3 = vadd.f32 %v912_v34, %v864_v8 }
 0x131   :  { %v775_v9 = vpop.f32.mrf.mxu3  ;;  %v866_v57 = vadd.f32 %v865_v21, %v817_v26  ;;  %v953_v12 = vmax.f32 %v913_v3, 0.0 }
 0x132   :  { %v776_v60 = vadd.f32 %v775_v9, %v2890_v0 }
 0x136   :  { %v914_v23 = vpop.f32.mrf.mxu2  ;;  %v819_v51 = vpop.f32.mrf.mxu0 }
 0x137   :  { %v915_v13 = vadd.f32 %v914_v23, %v866_v57  ;;  %v868_v32 = vpop.f32.mrf.mxu1  ;;  %v820_v22 = vadd.f32 %v819_v51, %v771_v58 }
 0x139   :  { %v955_v33 = vmax.f32 %v915_v13, 0.0  ;;  %v777_v20 = vpop.f32.mrf.mxu3  ;;  %v869_v59 = vadd.f32 %v868_v32, %v820_v22 }
 0x13a   :  { %1309 = vmatmul.bf16.gmra.mxu1 %v2815_v36  ;;  %v778_v62 = vadd.f32 %v777_v20, %v2890_v0 }
 0x13b   :  { %v985_v5 = vpack.c.bf16 %v955_v33, %v953_v12 }
 0x13d   :  { %1255 = vmatmul.bf16.vlgmr.msra.gmra.mxu0 %v985_v5  ;;  %1353 = vmatmul.bf16.vlgmr.msra.gmra.mxu2 %v985_v5 }
 0x13e   :  { %v917_v28 = vpop.f32.mrf.mxu2  ;;  %v821_v30 = vpop.f32.mrf.mxu0  ;;  %1221 = vmatmul.bf16.gmra.mxu3 %v2843_v37 }
 0x13f   :  { %v870_v38 = vpop.f32.mrf.mxu1  ;;  %v822_v35 = vadd.f32 %v821_v30, %v773_v50  ;;  %v918_v56 = vadd.f32 %v917_v28, %v869_v59 }
 0x141   :  { %v780_v16 = vpop.f32.mrf.mxu3  ;;  %v871_v61 = vadd.f32 %v870_v38, %v822_v35  ;;  %v957_v47 = vmax.f32 %v918_v56, 0.0 }
 0x142   :  { %v781_v31 = vadd.f32 %v780_v16, %v2890_v0 }
 0x146   :  { %v919_v40 = vpop.f32.mrf.mxu2  ;;  %v824_v39 = vpop.f32.mrf.mxu0 }
 0x147   :  { %v920_v17 = vadd.f32 %v919_v40, %v871_v61  ;;  %v873_v36 = vpop.f32.mrf.mxu1  ;;  %v825_v15 = vadd.f32 %v824_v39, %v776_v60 }
 0x149   :  { %v959_v45 = vmax.f32 %v920_v17, 0.0  ;;  %v782_v18 = vpop.f32.mrf.mxu3  ;;  %v874_v29 = vadd.f32 %v873_v36, %v825_v15 }
 0x14a   :  { %1314 = vmatmul.bf16.gmra.mxu1 %v2828_v24  ;;  %v783_v46 = vadd.f32 %v782_v18, %v2890_v0 }
 0x14b   :  { %v987_v49 = vpack.c.bf16 %v959_v45, %v957_v47 }
 0x14d   :  { %1260 = vmatmul.bf16.gmra.mxu0 %v987_v49  ;;  %1358 = vmatmul.bf16.gmra.mxu2 %v987_v49 }
 0x14e   :  { %v922_v54 = vpop.f32.mrf.mxu2  ;;  %v826_v55 = vpop.f32.mrf.mxu0  ;;  %1226 = vmatmul.bf16.gmra.mxu3 %v2858_v11 }
 0x14f   :  { %v875_v10 = vpop.f32.mrf.mxu1  ;;  %v827_v42 = vadd.f32 %v826_v55, %v778_v62  ;;  %v923_v44 = vadd.f32 %v922_v54, %v874_v29 }
 0x151   :  { %v785_v63 = vpop.f32.mrf.mxu3  ;;  %v876_v7 = vadd.f32 %v875_v10, %v827_v42  ;;  %v961_v53 = vmax.f32 %v923_v44, 0.0 }
 0x152   :  { %v786_v13 = vadd.f32 %v785_v63, %v2890_v0 }
 0x156   :  { %v924_v52 = vpop.f32.mrf.mxu2  ;;  %v829_v43 = vpop.f32.mrf.mxu0 }
 0x157   :  { %v925_v1 = vadd.f32 %v924_v52, %v876_v7  ;;  %v878_v24 = vpop.f32.mrf.mxu1  ;;  %v830_v27 = vadd.f32 %v829_v43, %v781_v31 }
 0x159   :  { %v963_v2 = vmax.f32 %v925_v1, 0.0  ;;  %v787_v19 = vpop.f32.mrf.mxu3  ;;  %v879_v21 = vadd.f32 %v878_v24, %v830_v27 }
 0x15a   :  { %1319 = vmatmul.bf16.gmra.mxu1 %v2843_v37  ;;  %v788_v28 = vadd.f32 %v787_v19, %v2890_v0 }
 0x15b   :  { %v989_v4 = vpack.c.bf16 %v963_v2, %v961_v53 }
 0x15d   :  { %1265 = vmatmul.bf16.gmra.mxu0 %v989_v4  ;;  %1363 = vmatmul.bf16.gmra.mxu2 %v989_v4 }
 0x15e   :  { %v927_v14 = vpop.f32.mrf.mxu2  ;;  %v831_v34 = vpop.f32.mrf.mxu0  ;;  %1231 = vmatmul.bf16.gmra.mxu3 %v2873_v6 }
 0x15f   :  { %v880_v25 = vpop.f32.mrf.mxu1  ;;  %v832_v8 = vadd.f32 %v831_v34, %v783_v46  ;;  %v928_v9 = vadd.f32 %v927_v14, %v879_v21 }
 0x161   :  { %v790_v26 = vpop.f32.mrf.mxu3  ;;  %v881_v3 = vadd.f32 %v880_v25, %v832_v8  ;;  %v965_v32 = vmax.f32 %v928_v9, 0.0 }
 0x162   :  { %v791_v39 = vadd.f32 %v790_v26, %v2890_v0 }
 0x166   :  { %v929_v57 = vpop.f32.mrf.mxu2  ;;  %v834_v23 = vpop.f32.mrf.mxu0 }
 0x167   :  { %v930_v51 = vadd.f32 %v929_v57, %v881_v3  ;;  %v883_v37 = vpop.f32.mrf.mxu1  ;;  %v835_v20 = vadd.f32 %v834_v23, %v786_v13 }
 0x169   :  { %v967_v58 = vmax.f32 %v930_v51, 0.0  ;;  %v792_v12 = vpop.f32.mrf.mxu3  ;;  %v884_v50 = vadd.f32 %v883_v37, %v835_v20 }
 0x16a   :  { %1324 = vmatmul.bf16.gmra.mxu1 %v2858_v11  ;;  %v793_v15 = vadd.f32 %v792_v12, %v2890_v0 }
 0x16b   :  { %v991_v33 = vpack.c.bf16 %v967_v58, %v965_v32 }
 0x16d   :  { %1270 = vmatmul.bf16.gmra.mxu0 %v991_v33  ;;  %1368 = vmatmul.bf16.gmra.mxu2 %v991_v33 }
 0x16e   :  { %v932_v5 = vpop.f32.mrf.mxu2  ;;  %v836_v22 = vpop.f32.mrf.mxu0  ;;  %1236 = vmatmul.bf16.gmra.mxu3 %v2884_v41 }
 0x16f   :  { %v885_v30 = vpop.f32.mrf.mxu1  ;;  %v837_v38 = vadd.f32 %v836_v22, %v788_v28  ;;  %v933_v35 = vadd.f32 %v932_v5, %v884_v50 }
 0x171   :  { %v795_v59 = vpop.f32.mrf.mxu3  ;;  %v886_v16 = vadd.f32 %v885_v30, %v837_v38  ;;  %v969_v17 = vmax.f32 %v933_v35, 0.0 }
 0x172   :  { %v796_v52 = vadd.f32 %v795_v59, %v2890_v0 }
 0x176   :  { %v934_v56 = vpop.f32.mrf.mxu2  ;;  %v839_v61 = vpop.f32.mrf.mxu0 }
 0x177   :  { %v935_v40 = vadd.f32 %v934_v56, %v886_v16  ;;  %v888_v11 = vpop.f32.mrf.mxu1  ;;  %v840_v45 = vadd.f32 %v839_v61, %v791_v39 }
 0x179   :  { %v971_v36 = vmax.f32 %v935_v40, 0.0  ;;  %v797_v60 = vpop.f32.mrf.mxu3  ;;  %v889_v55 = vadd.f32 %v888_v11, %v840_v45 }
 0x17a   :  { %1329 = vmatmul.bf16.gmra.mxu1 %v2873_v6  ;;  %v798_v4 = vadd.f32 %v797_v60, %v2890_v0 }
 0x17b   :  { %v993_v47 = vpack.c.bf16 %v971_v36, %v969_v17 }
 0x17d   :  { %1275 = vmatmul.bf16.gmra.mxu0 %v993_v47  ;;  %1373 = vmatmul.bf16.gmra.mxu2 %v993_v47 }
 0x17e   :  { %v937_v18 = vpop.f32.mrf.mxu2  ;;  %v841_v49 = vpop.f32.mrf.mxu0  ;;  %1241 = vmatmul.bf16.gmra.mxu3 %v2895_v48 }
 0x17f   :  { %v890_v54 = vpop.f32.mrf.mxu1  ;;  %v842_v62 = vadd.f32 %v841_v49, %v793_v15  ;;  %v938_v29 = vadd.f32 %v937_v18, %v889_v55 }
 0x181   :  { %v800_v10 = vpop.f32.mrf.mxu3  ;;  %v891_v42 = vadd.f32 %v890_v54, %v842_v62  ;;  %v973_v43 = vmax.f32 %v938_v29, 0.0 }
 0x186   :  { %v939_v63 = vpop.f32.mrf.mxu2  ;;  %v844_v44 = vpop.f32.mrf.mxu0 }
 0x187   :  { %v940_v7 = vadd.f32 %v939_v63, %v891_v42  ;;  %v893_v6 = vpop.f32.mrf.mxu1  ;;  %v845_v31 = vadd.f32 %v844_v44, %v796_v52 }
 0x189   :  { %v975_v1 = vmax.f32 %v940_v7, 0.0  ;;  %v802_v53 = vpop.f32.mrf.mxu3  ;;  %v894_v14 = vadd.f32 %v893_v6, %v845_v31 }
 0x18a   :  { %1334 = vmatmul.bf16.gmra.mxu1 %v2884_v41  ;;  %v801_v41 = vadd.f32 %v800_v10, %v2890_v0  ;;  %v803_v58 = vadd.f32 %v802_v53, %v2890_v0  ;;  %v1032_v0 = vld [vmem:[%s3013_s4] sm:$0x3] }
 0x18b   :  { %v995_v24 = vpack.c.bf16 %v975_v1, %v973_v43  ;;  %v2928_v61 = vperm.slane %v1032_v0, 0  ;;  %v2931_v36 = vperm.slane %v1032_v0, 1 }
 0x18d   :  { %1280 = vmatmul.bf16.gmra.mxu0 %v995_v24  ;;  %1378 = vmatmul.bf16.gmra.mxu2 %v995_v24 }
 0x18e   :  { %v942_v2 = vpop.f32.mrf.mxu2  ;;  %v846_v19 = vpop.f32.mrf.mxu0 }
 0x18f   :  { %v895_v27 = vpop.f32.mrf.mxu1  ;;  %v847_v34 = vadd.f32 %v846_v19, %v798_v4  ;;  %v943_v46 = vadd.f32 %v942_v2, %v894_v14 }
 0x191   :  { %v896_v25 = vadd.f32 %v895_v27, %v847_v34  ;;  %v1207_v3 = vpop.f32.mrf.mxu3  ;;  %v977_v57 = vmax.f32 %v943_v46, 0.0 }
 0x192   :  { %v1208_v39 = vadd.f32 %v1207_v3, %v2928_v61 }
 0x196   :  { %v944_v21 = vpop.f32.mrf.mxu2  ;;  %v849_v8 = vpop.f32.mrf.mxu0 }
 0x197   :  { %v945_v26 = vadd.f32 %v944_v21, %v896_v25  ;;  %v898_v9 = vpop.f32.mrf.mxu1  ;;  %v850_v37 = vadd.f32 %v849_v8, %v801_v41 }
 0x199   :  { %v979_v23 = vmax.f32 %v945_v26, 0.0  ;;  %v899_v33 = vadd.f32 %v898_v9, %v850_v37  ;;  %v1209_v5 = vpop.f32.mrf.mxu3 }
 0x19a   :  { %1339 = vmatmul.bf16.gmra.mxu1 %v2895_v48  ;;  %v1210_v15 = vadd.f32 %v1209_v5, %v2928_v61 }
 0x19b   :  { %v997_v51 = vpack.c.bf16 %v979_v23, %v977_v57 }
 0x19d   :  { %1285 = vmatmul.bf16.gmra.mxu0 %v997_v51  ;;  %1383 = vmatmul.bf16.gmra.mxu2 %v997_v51 }
 0x19e   :  { %v947_v13 = vpop.f32.mrf.mxu2  ;;  %v851_v32 = vpop.f32.mrf.mxu0 }
 0x19f   :  { %v900_v12 = vpop.f32.mrf.mxu1  ;;  %v852_v20 = vadd.f32 %v851_v32, %v803_v58  ;;  %v948_v22 = vadd.f32 %v947_v13, %v899_v33 }
 0x1a1   :  { %v901_v28 = vadd.f32 %v900_v12, %v852_v20  ;;  %v981_v59 = vmax.f32 %v948_v22, 0.0  ;;  %v1212_v16 = vpop.f32.mrf.mxu3 }
 0x1a2   :  { %v1213_v6 = vadd.f32 %v1212_v16, %v2928_v61 }
 0x1a6   :  { %v949_v30 = vpop.f32.mrf.mxu2 }
 0x1a7   :  { %v950_v50 = vadd.f32 %v949_v30, %v901_v28  ;;  %v1305_v38 = vpop.f32.mrf.mxu1 }
 0x1a8   :  { %v1306_v47 = vadd.f32 %v1305_v38, %v2931_v36 }
 0x1a9   :  { %v983_v35 = vmax.f32 %v950_v50, 0.0  ;;  %v1214_v40 = vpop.f32.mrf.mxu3 }
 0x1aa   :  { %v1215_v14 = vadd.f32 %v1214_v40, %v2928_v61 }
 0x1ab   :  { %v999_v48 = vpack.c.bf16 %v983_v35, %v981_v59 }
 0x1ad   :  { %1290 = vmatmul.bf16.gmra.mxu0 %v999_v48  ;;  %1388 = vmatmul.bf16.gmra.mxu2 %v999_v48 }
 0x1af   :  { %v1307_v56 = vpop.f32.mrf.mxu1 }
 0x1b0   :  { %v1308_v42 = vadd.f32 %v1307_v56, %v2931_v36 }
 0x1b1   :  { %v1217_v18 = vpop.f32.mrf.mxu3 }
 0x1b2   :  { %v1218_v57 = vadd.f32 %v1217_v18, %v2928_v61 }
 0x1b7   :  { %v1310_v11 = vpop.f32.mrf.mxu1 }
 0x1b8   :  { %v1311_v19 = vadd.f32 %v1310_v11, %v2931_v36 }
 0x1b9   :  { %v1219_v43 = vpop.f32.mrf.mxu3 }
 0x1ba   :  { %v1256_v17 = vpop.f32.mrf.mxu0  ;;  %v1220_v22 = vadd.f32 %v1219_v43, %v2928_v61 }
 0x1bb   :  { %v1257_v60 = vadd.f32 %v1256_v17, %v1208_v39 }
 0x1bd   :  { %v1394_v10 = vmax.f32 %v1257_v60, 0.0 }
 0x1bf   :  { %v1312_v45 = vpop.f32.mrf.mxu1 }
 0x1c0   :  { %v1354_v49 = vpop.f32.mrf.mxu2  ;;  %v1313_v9 = vadd.f32 %v1312_v45, %v2931_v36 }
 0x1c1   :  { %v1355_v54 = vadd.f32 %v1354_v49, %v1306_v47  ;;  %v1222_v21 = vpop.f32.mrf.mxu3 }
 0x1c2   :  { %v1258_v55 = vpop.f32.mrf.mxu0  ;;  %v1223_v40 = vadd.f32 %v1222_v21, %v2928_v61 }
 0x1c3   :  { %v1259_v62 = vadd.f32 %v1258_v55, %v1210_v15  ;;  %v1395_v24 = vmax.f32 %v1355_v54, 0.0 }
 0x1c5   :  { %v1396_v29 = vmax.f32 %v1259_v62, 0.0 }
 0x1c7   :  { %v2936_v63 = vpack.c.bf16 %v1396_v29, %v1394_v10  ;;  %v1315_v44 = vpop.f32.mrf.mxu1 }
 0x1c8   :  { %v1356_v7 = vpop.f32.mrf.mxu2  ;;  %v1316_v20 = vadd.f32 %v1315_v44, %v2931_v36 }
 0x1c9   :  { %v1357_v52 = vadd.f32 %v1356_v7, %v1308_v42  ;;  %v1224_v33 = vpop.f32.mrf.mxu3 }
 0x1ca   :  { %v1261_v1 = vpop.f32.mrf.mxu0  ;;  %v1225_v54 = vadd.f32 %v1224_v33, %v2928_v61 }
 0x1cb   :  { %v1397_v31 = vmax.f32 %v1357_v52, 0.0  ;;  %v1262_v53 = vadd.f32 %v1261_v1, %v1213_v6 }
 0x1cd   :  { %v2939_v2 = vpack.c.bf16 %v1397_v31, %v1395_v24  ;;  %v1398_v8 = vmax.f32 %v1262_v53, 0.0 }
 0x1cf   :  { %v1317_v4 = vpop.f32.mrf.mxu1 }
 0x1d0   :  { %v1359_v27 = vpop.f32.mrf.mxu2  ;;  %v1318_v48 = vadd.f32 %v1317_v4, %v2931_v36 }
 0x1d1   :  { %v1360_v34 = vadd.f32 %v1359_v27, %v1311_v19  ;;  %v1227_v56 = vpop.f32.mrf.mxu3 }
 0x1d2   :  { %v1263_v46 = vpop.f32.mrf.mxu0  ;;  %v1228_v1 = vadd.f32 %v1227_v56, %v2928_v61 }
 0x1d3   :  { %v1264_v25 = vadd.f32 %v1263_v46, %v1215_v14  ;;  %v1399_v13 = vmax.f32 %v1360_v34, 0.0 }
 0x1d5   :  { %v1400_v26 = vmax.f32 %v1264_v25, 0.0 }
 0x1d7   :  { %v2944_v3 = vpack.c.bf16 %v1400_v26, %v1398_v8  ;;  %v1320_v51 = vpop.f32.mrf.mxu1 }
 0x1d8   :  { %v1361_v41 = vpop.f32.mrf.mxu2  ;;  %v1321_v49 = vadd.f32 %v1320_v51, %v2931_v36 }
 0x1d9   :  { %v1362_v23 = vadd.f32 %v1361_v41, %v1313_v9  ;;  %v1229_v62 = vpop.f32.mrf.mxu3 }
 0x1da   :  { %v1266_v37 = vpop.f32.mrf.mxu0  ;;  %v1230_v25 = vadd.f32 %v1229_v62, %v2928_v61 }
 0x1db   :  { %v1401_v32 = vmax.f32 %v1362_v23, 0.0  ;;  %v1267_v58 = vadd.f32 %v1266_v37, %v1218_v57 }
 0x1dd   :  { %v2947_v12 = vpack.c.bf16 %v1401_v32, %v1399_v13  ;;  %v1402_v59 = vmax.f32 %v1267_v58, 0.0 }
 0x1df   :  { %v1322_v38 = vpop.f32.mrf.mxu1 }
 0x1e0   :  { %v1364_v5 = vpop.f32.mrf.mxu2  ;;  %v1323_v7 = vadd.f32 %v1322_v38, %v2931_v36 }
 0x1e1   :  { %v1365_v28 = vadd.f32 %v1364_v5, %v1316_v20  ;;  %v2963_v27 = vpop.f32.mrf.mxu3 }
 0x1e2   :  { %v1268_v30 = vpop.f32.mrf.mxu0 }
 0x1e3   :  { %v1269_v50 = vadd.f32 %v1268_v30, %v1220_v22  ;;  %v1403_v17 = vmax.f32 %v1365_v28, 0.0 }
 0x1e5   :  { %v1404_v35 = vmax.f32 %v1269_v50, 0.0 }
 0x1e7   :  { %v2952_v16 = vpack.c.bf16 %v1404_v35, %v1402_v59  ;;  %v1325_v18 = vpop.f32.mrf.mxu1 }
 0x1e8   :  { %v1366_v0 = vpop.f32.mrf.mxu2  ;;  %v1326_v34 = vadd.f32 %v1325_v18, %v2931_v36 }
 0x1e9   :  { %v1367_v11 = vadd.f32 %v1366_v0, %v1318_v48  ;;  %v1234_v23 = vpop.f32.mrf.mxu3 }
 0x1ea   :  { %v1271_v39 = vpop.f32.mrf.mxu0 }
 0x1eb   :  { %v1405_v60 = vmax.f32 %v1367_v11, 0.0  ;;  %v1272_v47 = vadd.f32 %v1271_v39, %v1223_v40 }
 0x1ed   :  { %v2955_v45 = vpack.c.bf16 %v1405_v60, %v1403_v17  ;;  %v1406_v42 = vmax.f32 %v1272_v47, 0.0 }
 0x1ef   :  { %v1327_v52 = vpop.f32.mrf.mxu1 }
 0x1f0   :  { %v1369_v15 = vpop.f32.mrf.mxu2  ;;  %v1328_v51 = vadd.f32 %v1327_v52, %v2931_v36 }
 0x1f1   :  { %v1370_v55 = vadd.f32 %v1369_v15, %v1321_v49  ;;  %v1237_v28 = vpop.f32.mrf.mxu3 }
 0x1f2   :  { %v1273_v10 = vpop.f32.mrf.mxu0  ;;  %v1238_v52 = vadd.f32 %v1237_v28, %v2928_v61 }
 0x1f3   :  { %v1274_v29 = vadd.f32 %v1273_v10, %v1225_v54  ;;  %v1407_v53 = vmax.f32 %v1370_v55, 0.0 }
 0x1f5   :  { %v1408_v44 = vmax.f32 %v1274_v29, 0.0 }
 0x1f7   :  { %v2960_v6 = vpack.c.bf16 %v1408_v44, %v1406_v42  ;;  %v2969_v8 = vpop.f32.mrf.mxu1 }
 0x1f8   :  { %v1371_v43 = vpop.f32.mrf.mxu2 }
 0x1f9   :  { %v1372_v24 = vadd.f32 %v1371_v43, %v1323_v7  ;;  %v1239_v35 = vpop.f32.mrf.mxu3 }
 0x1fa   :  { %v1276_v31 = vpop.f32.mrf.mxu0  ;;  %v1240_v29 = vadd.f32 %v1239_v35, %v2928_v61 }
 0x1fb   :  { %v1409_v19 = vmax.f32 %v1372_v24, 0.0  ;;  %v1277_v4 = vadd.f32 %v1276_v31, %v1228_v1 }
 0x1fd   :  { %v2965_v14 = vpack.c.bf16 %v1409_v19, %v1407_v53  ;;  %v1410_v41 = vmax.f32 %v1277_v4, 0.0 }
 0x1ff   :  { %v1332_v5 = vpop.f32.mrf.mxu1 }
 0x200   :  { %v1374_v46 = vpop.f32.mrf.mxu2 }
 0x201   :  { %v1375_v21 = vadd.f32 %v1374_v46, %v1326_v34  ;;  %v1242_v11 = vpop.f32.mrf.mxu3 }
 0x202   :  { %v1278_v26 = vpop.f32.mrf.mxu0  ;;  %v1243_v18 = vadd.f32 %v1242_v11, %v2928_v61 }
 0x203   :  { %v1279_v9 = vadd.f32 %v1278_v26, %v1230_v25  ;;  %v1411_v33 = vmax.f32 %v1375_v21, 0.0  ;;  %v1235_v26 = vadd.f32 %v1234_v23, %v2928_v61  ;;  %v1331_v23 = vadd.f32 %v2969_v8, %v2931_v36 }
 0x205   :  { %v1412_v57 = vmax.f32 %v1279_v9, 0.0 }
 0x207   :  { %v2972_v37 = vpack.c.bf16 %v1412_v57, %v1410_v41  ;;  %v1335_v38 = vpop.f32.mrf.mxu1 }
 0x208   :  { %v1376_v13 = vpop.f32.mrf.mxu2  ;;  %v1336_v9 = vadd.f32 %v1335_v38, %v2931_v36 }
 0x209   :  { %v1377_v32 = vadd.f32 %v1376_v13, %v1328_v51  ;;  %v1244_v47 = vpop.f32.mrf.mxu3  ;;  %v1233_v13 = vadd.f32 %v2963_v27, %v2928_v61 }
 0x20a   :  { %v1281_v58 = vpop.f32.mrf.mxu0  ;;  %v1245_v15 = vadd.f32 %v1244_v47, %v2928_v61 }
 0x20b   :  { %v1413_v20 = vmax.f32 %v1377_v32, 0.0  ;;  %v1282_v28 = vadd.f32 %v1281_v58, %v1233_v13  ;;  %v1426_v58 = vld [vmem:[%s3014_s5] sm:$0x3] }
 0x20c   :  { %1446 = vst [vmem:[#allocation1] ss:$9 sm:$0xff] %v1426_v58 }
 0x20d   :  { %v2974_v22 = vpack.c.bf16 %v1413_v20, %v1411_v33  ;;  %v1414_v38 = vmax.f32 %v1282_v28, 0.0 }
 0x20f   :  { %v1337_v56 = vpop.f32.mrf.mxu1 }
 0x210   :  { %v1379_v30 = vpop.f32.mrf.mxu2  ;;  %v1338_v34 = vadd.f32 %v1337_v56, %v2931_v36 }
 0x212   :  { %v1283_v50 = vpop.f32.mrf.mxu0 }
 0x213   :  { %v1284_v32 = vadd.f32 %v1283_v50, %v1235_v26  ;;  %v1448_v8 = vld [vmem:[#allocation1 + $0x9] sm:$0xff] }
 0x215   :  { %v1416_v56 = vmax.f32 %v1284_v32, 0.0 }
 0x217   :  { %v1340_v17 = vpop.f32.mrf.mxu1 }
 0x218   :  { %v1381_v59 = vpop.f32.mrf.mxu2  ;;  %v1341_v42 = vadd.f32 %v1340_v17, %v2931_v36  ;;  %v1380_v17 = vadd.f32 %v1379_v30, %v1331_v23 }
 0x21a   :  { %v1286_v48 = vpop.f32.mrf.mxu0  ;;  %v1415_v27 = vmax.f32 %v1380_v17, 0.0 }
 0x21b   :  { %v1287_v19 = vadd.f32 %v1286_v48, %v1238_v52  ;;  %v1333_v48 = vadd.f32 %v1332_v5, %v2931_v36 }
 0x21d   :  { %v1418_v41 = vmax.f32 %v1287_v19, 0.0  ;;  %v1382_v11 = vadd.f32 %v1381_v59, %v1333_v48 }
 0x21f   :  { %v1342_v10 = vpop.f32.mrf.mxu1  ;;  %v1417_v61 = vmax.f32 %v1382_v11, 0.0 }
 0x220   :  { %v1384_v0 = vpop.f32.mrf.mxu2  ;;  %v1343_v43 = vadd.f32 %v1342_v10, %v2931_v36  ;;  %v1447_v36 = vld [vmem:[#allocation1] sm:$0xff] }
 0x221   :  { %v1385_v33 = vadd.f32 %v1384_v0, %v1336_v9  ;;  %v1438_v50 = vpack.c.bf16 %v1417_v61, %v1415_v27 }
 0x222   :  { %v1288_v40 = vpop.f32.mrf.mxu0 }
 0x223   :  { %v1289_v1 = vadd.f32 %v1288_v40, %v1240_v29  ;;  %v1419_v40 = vmax.f32 %v1385_v33, 0.0 }
 0x225   :  { %v1420_v46 = vmax.f32 %v1289_v1, 0.0 }
 0x227   :  { %v1439_v20 = vpack.c.bf16 %v1420_v46, %v1418_v41 }
 0x228   :  { %v1386_v39 = vpop.f32.mrf.mxu2 }
 0x229   :  { %v1387_v57 = vadd.f32 %v1386_v39, %v1338_v34 }
 0x22a   :  { %v1291_v60 = vpop.f32.mrf.mxu0 }
 0x22b   :  { %v1292_v54 = vadd.f32 %v1291_v60, %v1243_v18  ;;  %v1421_v35 = vmax.f32 %v1387_v57, 0.0  ;;  %v1437_v60 = vpack.c.bf16 %v1416_v56, %v1414_v38 }
 0x22d   :  { %v1422_v44 = vmax.f32 %v1292_v54, 0.0  ;;  %v1440_v39 = vpack.c.bf16 %v1421_v35, %v1419_v40 }
 0x230   :  { %v1389_v49 = vpop.f32.mrf.mxu2 }
 0x231   :  { %v1390_v24 = vadd.f32 %v1389_v49, %v1341_v42 }
 0x232   :  { %v1293_v55 = vpop.f32.mrf.mxu0 }
 0x233   :  { %v1294_v62 = vadd.f32 %v1293_v55, %v1245_v15  ;;  %v1423_v25 = vmax.f32 %v1390_v24, 0.0 }
 0x235   :  { %v1424_v7 = vmax.f32 %v1294_v62, 0.0 }
 0x237   :  { %v1441_v31 = vpack.c.bf16 %v1424_v7, %v1422_v44 }
 0x238   :  { %v1391_v53 = vpop.f32.mrf.mxu2 }
 0x239   :  { %v1392_v4 = vadd.f32 %v1391_v53, %v1343_v43  ;;  %1451 = vmatpush.bf16.xpose.msrb.mxu3 %v1441_v31 }
 0x23b   :  { %v1425_v21 = vmax.f32 %v1392_v4, 0.0 }
 0x23d   :  { %v1442_v51 = vpack.c.bf16 %v1425_v21, %v1423_v25 }
 0x23f   :  { %1464 = vmatpush.bf16.xpose.msrb.mxu0 %v1442_v51 }
 0x241   :  { %1452 = vmatpush.bf16.xpose.msrb.mxu3 %v1439_v20 }
 0x247   :  { %1465 = vmatpush.bf16.xpose.msrb.mxu0 %v1440_v39 }
 0x249   :  { %1453 = vmatpush.bf16.xpose.msrb.mxu3 %v1437_v60 }
 0x24f   :  { %1466 = vmatpush.bf16.xpose.msrb.mxu0 %v1438_v50 }
 0x251   :  { %1454 = vmatpush.bf16.xpose.msrb.mxu3 %v2972_v37 }
 0x257   :  { %1467 = vmatpush.bf16.xpose.msrb.mxu0 %v2974_v22 }
 0x259   :  { %1455 = vmatpush.bf16.xpose.msrb.mxu3 %v2960_v6  ;;  %v1444_v6 = vstv %s3015_s6 }
 0x25f   :  { %1468 = vmatpush.bf16.xpose.msrb.mxu0 %v2965_v14 }
 0x261   :  { %1456 = vmatpush.bf16.xpose.msrb.mxu3 %v2952_v16 }
 0x267   :  { %1469 = vmatpush.bf16.xpose.msrb.mxu0 %v2955_v45 }
 0x269   :  { %1457 = vmatpush.bf16.xpose.msrb.mxu3 %v2944_v3 }
 0x26f   :  { %1470 = vmatpush.bf16.xpose.msrb.mxu0 %v2947_v12 }
 0x271   :  { %1458 = vmatpush.bf16.xpose.msrb.mxu3 %v2936_v63 }
 0x277   :  { %1471 = vmatpush.bf16.xpose.msrb.mxu0 %v2939_v2 }
 0x278   :  { %1459 = vmatmul.bf16.vlgmr.msrb.gmra.mxu3 %v1447_v36 }
 0x27e   :  { %1472 = vmatmul.bf16.vlgmr.msrb.gmra.mxu0 %v1448_v8 }
 0x2fb   :  { %v1460_v14 = vpop.f32.mrf.mxu3  ;;  %v1473_v16 = vpop.f32.mrf.mxu0 }
 0x2fc   :  { %v1461_v3 = vadd.f32 %v1460_v14, %v1444_v6 }
 0x2fe   :  { %v1474_v63 = vadd.f32 %v1473_v16, %v1461_v3 }
 0x300   :  { %1477 = vst [vmem:[#allocation6] sm:$0x1] %v1474_v63 }
 0x301   :  { %1488 = dma.vmem_to_hbm [thread:$0]  %s1484_s27, 16, %s1486_s30, [#allocation5]  }
 0x303   :  { %v1462_v2 = vpop.f32.mrf.mxu3  ;;  %v1475_v12 = vpop.f32.mrf.mxu0 }
 0x304   :  { %2135 = dma.done.wait [#allocation5], 16  }
 0x305   :  { %2136 = vsyncadd [#allocation5], 4294967280 }
 0x306   :  { %1493 = vsyncpa [#allocation4], 1 }
 0x307   :  { %1494 = vsyncpa [#allocation5], 1 }

</bundles_post_ra>
